<compile_context>
chip_gen: v7x
topology: tpu7x:2x2x1
jax: 0.10.0
libtpu: 0.0.40
codegen_flags: <defaults>
</compile_context>

<pallas_src>
import functools

import jax
import jax.numpy as jnp
from jax.experimental import pallas as pl
from jax.experimental.pallas import tpu as pltpu


# ----------------------------------------------------------------------------
# In-kernel helpers
# ----------------------------------------------------------------------------
def _ln(x, g, b, eps):
    mu = jnp.mean(x, axis=-1, keepdims=True)
    var = jnp.mean((x - mu) ** 2, axis=-1, keepdims=True)
    return (x - mu) * jax.lax.rsqrt(var + eps) * g + b


# ----------------------------------------------------------------------------
# Kernel 1: embedding layernorm (single launch over all stacked tokens)
# ----------------------------------------------------------------------------
def _embed_ln_kernel(x_ref, g_ref, b_ref, o_ref, *, eps):
    o_ref[...] = _ln(x_ref[...], g_ref[...], b_ref[...], eps).astype(o_ref.dtype)


def embed_layernorm(x, gamma, beta, eps=1e-12):
    """x: [M, H], gamma/beta: [H]."""
    M, H = x.shape
    return pl.pallas_call(
        functools.partial(_embed_ln_kernel, eps=eps),
        out_shape=jax.ShapeDtypeStruct((M, H), x.dtype),
        grid=(1,),
        in_specs=[
            pl.BlockSpec((M, H), lambda i: (0, 0)),
            pl.BlockSpec((1, H), lambda i: (0, 0)),
            pl.BlockSpec((1, H), lambda i: (0, 0)),
        ],
        out_specs=pl.BlockSpec((M, H), lambda i: (0, 0)),
    )(x, gamma.reshape(1, H), beta.reshape(1, H))


# ----------------------------------------------------------------------------
# Kernel 2: one fully-fused BERT encoder layer
#   QKV (fused, N=3H) -> per-head attention -> output proj (accumulated per head)
#   -> add&LN -> FFN (gelu) -> add&LN, all in VMEM.
# ----------------------------------------------------------------------------
def _bert_layer_kernel(x_ref, mask_ref, wqkv_ref, bqkv_ref, wo_ref, bo_ref,
                       ln1g_ref, ln1b_ref, wi_ref, bi_ref, wf_ref, bf_ref,
                       ln2g_ref, ln2b_ref, o_ref, *,
                       num_heads, head_dim, batch, seq, eps):
    H = num_heads * head_dim
    x = x_ref[...]                               # [B*S, H] (per-tower block)
    mask = mask_ref[...]                         # [B, 1, S] additive mask
    scale = 1.0 / (head_dim ** 0.5)

    # Fused QKV projection: one MXU pass, N = 3H.
    qkv = jnp.dot(x, wqkv_ref[...], preferred_element_type=jnp.float32) + bqkv_ref[...]

    wo = wo_ref[...]                             # [H, H]
    # Per-head attention. The output projection is accumulated per head:
    #   ctx @ Wo == sum_h ctx_h @ Wo[h*dh:(h+1)*dh, :]
    # so no head-concat / transpose is ever materialized.
    attn_out = jnp.zeros((batch * seq, H), jnp.float32)
    for h in range(num_heads):
        q = qkv[:, h * head_dim:(h + 1) * head_dim].reshape(batch, seq, head_dim)
        k = qkv[:, H + h * head_dim:H + (h + 1) * head_dim].reshape(batch, seq, head_dim)
        v = qkv[:, 2 * H + h * head_dim:2 * H + (h + 1) * head_dim].reshape(batch, seq, head_dim)

        s = jnp.einsum("bqd,bkd->bqk", q, k,
                       preferred_element_type=jnp.float32) * scale + mask
        s = s - jnp.max(s, axis=-1, keepdims=True)
        p = jnp.exp(s)
        p = p / jnp.sum(p, axis=-1, keepdims=True)

        ctx = jnp.einsum("bqk,bkd->bqd", p, v,
                         preferred_element_type=jnp.float32)
        ctx = ctx.reshape(batch * seq, head_dim)
        attn_out = attn_out + jnp.dot(ctx, wo[h * head_dim:(h + 1) * head_dim, :],
                                      preferred_element_type=jnp.float32)
    attn_out = attn_out + bo_ref[...]

    x = _ln(attn_out + x, ln1g_ref[...], ln1b_ref[...], eps)

    ff = jnp.dot(x, wi_ref[...], preferred_element_type=jnp.float32) + bi_ref[...]
    # TODO(synk): HF BERT uses exact erf-GELU; tanh approximation used for safe Mosaic lowering.
    ff = jax.nn.gelu(ff, approximate=True)
    ff = jnp.dot(ff, wf_ref[...], preferred_element_type=jnp.float32) + bf_ref[...]

    x = _ln(ff + x, ln2g_ref[...], ln2b_ref[...], eps)
    o_ref[...] = x.astype(o_ref.dtype)


def bert_layer(x2, mask3, lp, cfg, n_tower, per_tower_batch, seq):
    """x2: [n_tower*B*S, H]; mask3: [n_tower*B, 1, S] additive mask."""
    H, nH, I = cfg["hidden"], cfg["heads"], cfg["intermediate"]
    dh = H // nH
    BS = per_tower_batch * seq

    kernel = functools.partial(_bert_layer_kernel, num_heads=nH, head_dim=dh,
                               batch=per_tower_batch, seq=seq, eps=1e-12)

    def rep(shape):
        # replicated (weight) block: same whole-array block for every grid step
        return pl.BlockSpec(shape, lambda t, _s=len(shape): (0,) * _s)

    return pl.pallas_call(
        kernel,
        out_shape=jax.ShapeDtypeStruct(x2.shape, x2.dtype),
        grid=(n_tower,),
        in_specs=[
            pl.BlockSpec((BS, H), lambda t: (t, 0)),                       # activations
            pl.BlockSpec((per_tower_batch, 1, seq), lambda t: (t, 0, 0)),  # additive mask
            rep((H, 3 * H)), rep((1, 3 * H)),                              # fused QKV
            rep((H, H)), rep((1, H)),                                      # attn output proj
            rep((1, H)), rep((1, H)),                                      # LN1
            rep((H, I)), rep((1, I)),                                      # FFN in
            rep((I, H)), rep((1, H)),                                      # FFN out
            rep((1, H)), rep((1, H)),                                      # LN2
        ],
        out_specs=pl.BlockSpec((BS, H), lambda t: (t, 0)),
        compiler_params=pltpu.CompilerParams(
            dimension_semantics=("parallel",)),   # towers shard across TCs on v7x
    )(x2, mask3,
      lp["wqkv"], lp["bqkv"].reshape(1, 3 * H),
      lp["wo"], lp["bo"].reshape(1, H),
      lp["ln1_g"].reshape(1, H), lp["ln1_b"].reshape(1, H),
      lp["wi"], lp["bi"].reshape(1, I),
      lp["wf"], lp["bf"].reshape(1, H),
      lp["ln2_g"].reshape(1, H), lp["ln2_b"].reshape(1, H))


# ----------------------------------------------------------------------------
# Kernel 3: fused pooler (tanh dense) + siamese classifier head
#   logits = [tanh(c1 Wp+bp), tanh(c2 Wp+bp), |.-.|] @ W + b, with W split row-wise.
# ----------------------------------------------------------------------------
def _pool_head_kernel(cls1_ref, cls2_ref, wp_ref, bp_ref,
                      w1_ref, w2_ref, w3_ref, bcls_ref, o_ref):
    wp = wp_ref[...]
    bp = bp_ref[...]
    p1 = jnp.tanh(jnp.dot(cls1_ref[...], wp, preferred_element_type=jnp.float32) + bp)
    p2 = jnp.tanh(jnp.dot(cls2_ref[...], wp, preferred_element_type=jnp.float32) + bp)
    diff = jnp.abs(p1 - p2)
    o = (jnp.dot(p1, w1_ref[...], preferred_element_type=jnp.float32)
         + jnp.dot(p2, w2_ref[...], preferred_element_type=jnp.float32)
         + jnp.dot(diff, w3_ref[...], preferred_element_type=jnp.float32)
         + bcls_ref[...])
    o_ref[...] = o.astype(o_ref.dtype)


def pool_and_classify(cls1, cls2, pooler_w, pooler_b, cls_w, cls_b):
    """cls1/cls2: [B, H]; cls_w: [3H, L] (rows ordered [u, v, |u-v|]); -> logits [B, L]."""
    B, H = cls1.shape
    L = cls_w.shape[1]
    w1, w2, w3 = cls_w[:H], cls_w[H:2 * H], cls_w[2 * H:]

    def rep(shape):
        return pl.BlockSpec(shape, lambda i, _s=len(shape): (0,) * _s)

    return pl.pallas_call(
        _pool_head_kernel,
        out_shape=jax.ShapeDtypeStruct((B, L), cls1.dtype),
        grid=(1,),
        in_specs=[rep((B, H)), rep((B, H)), rep((H, H)), rep((1, H)),
                  rep((H, L)), rep((H, L)), rep((H, L)), rep((1, L))],
        out_specs=rep((B, L)),
    )(cls1, cls2, pooler_w, pooler_b.reshape(1, H), w1, w2, w3, cls_b.reshape(1, L))


# ----------------------------------------------------------------------------
# Model configuration / parameters
# ----------------------------------------------------------------------------
CFG = dict(vocab=100, hidden=32, heads=2, layers=2, intermediate=64,
           max_pos=16, type_vocab=2, num_labels=2)


def init_params(key, cfg):
    H, I, L = cfg["hidden"], cfg["intermediate"], cfg["num_labels"]
    assert H % cfg["heads"] == 0

    def nrm(k, shape):
        return 0.02 * jax.random.normal(k, shape, dtype=jnp.float32)

    keys = iter(jax.random.split(key, 64))
    params = {
        "word_emb": nrm(next(keys), (cfg["vocab"], H)),
        "pos_emb": nrm(next(keys), (cfg["max_pos"], H)),
        "type_emb": nrm(next(keys), (cfg["type_vocab"], H)),
        "emb_ln_g": jnp.ones((H,), jnp.float32),
        "emb_ln_b": jnp.zeros((H,), jnp.float32),
        "pooler_w": nrm(next(keys), (H, H)),
        "pooler_b": jnp.zeros((H,), jnp.float32),
        # [3H, L]: row blocks ordered [u, v, |u-v|] (i.e. transpose of torch Linear's [L, 3H]).
        "cls_w": nrm(next(keys), (3 * H, L)),
        "cls_b": jnp.zeros((L,), jnp.float32),
        "layers": [],
    }
    for _ in range(cfg["layers"]):
        lp = {
            # fused QKV: columns ordered [Q | K | V], heads contiguous within each block.
            "wqkv": nrm(next(keys), (H, 3 * H)),
            "bqkv": jnp.zeros((3 * H,), jnp.float32),
            "wo": nrm(next(keys), (H, H)), "bo": jnp.zeros((H,), jnp.float32),
            "ln1_g": jnp.ones((H,), jnp.float32), "ln1_b": jnp.zeros((H,), jnp.float32),
            "wi": nrm(next(keys), (H, I)), "bi": jnp.zeros((I,), jnp.float32),
            "wf": nrm(next(keys), (I, H)), "bf": jnp.zeros((H,), jnp.float32),
            "ln2_g": jnp.ones((H,), jnp.float32), "ln2_b": jnp.zeros((H,), jnp.float32),
        }
        params["layers"].append(lp)
    return params


# ----------------------------------------------------------------------------
# Forward pass
# ----------------------------------------------------------------------------
def bert_classifier_forward(params,
                            input_ids_text1, token_type_ids_text1, attention_mask_text1,
                            input_ids_text2, token_type_ids_text2, attention_mask_text2,
                            cfg=CFG):
    B, S = input_ids_text1.shape
    H = cfg["hidden"]
    n_tower = 2

    # Stack the two siamese towers along the batch axis -> one encoder pass.
    ids = jnp.concatenate([input_ids_text1, input_ids_text2], axis=0)       # [2B, S]
    tts = jnp.concatenate([token_type_ids_text1, token_type_ids_text2], axis=0)
    ams = jnp.concatenate([attention_mask_text1, attention_mask_text2], axis=0)

    # Embedding gathers stay in plain JAX (no clean Pallas gather at this size).
    emb = (params["word_emb"][ids]
           + params["pos_emb"][jnp.arange(S)][None, :, :]
           + params["type_emb"][tts])                                       # [2B, S, H]
    x2 = embed_layernorm(emb.reshape(n_tower * B * S, H),
                         params["emb_ln_g"], params["emb_ln_b"])            # [2B*S, H]

    # Additive attention mask, broadcast inside the kernel: [2B, 1, S].
    mask3 = ((1.0 - ams.astype(jnp.float32)) * -10000.0)[:, None, :]

    for lp in params["layers"]:
        x2 = bert_layer(x2, mask3, lp, cfg, n_tower=n_tower,
                        per_tower_batch=B, seq=S)

    cls = x2.reshape(n_tower * B, S, H)[:, 0, :]                            # [2B, H]
    cls1, cls2 = cls[:B], cls[B:]

    # Fused: pooler tanh-dense for both towers + |u-v| + concat + Linear(3H -> L).
    logits = pool_and_classify(cls1, cls2, params["pooler_w"], params["pooler_b"],
                               params["cls_w"], params["cls_b"])
    return logits


# ----------------------------------------------------------------------------
# Demo
# ----------------------------------------------------------------------------
if __name__ == "__main__":
    B, S = 2, 8
    key = jax.random.PRNGKey(0)
    k_params, k_ids1, k_ids2, k_tt2 = jax.random.split(key, 4)

    params = init_params(k_params, CFG)

    input_ids_1 = jax.random.randint(k_ids1, (B, S), 0, CFG["vocab"], dtype=jnp.int32)
    input_ids_2 = jax.random.randint(k_ids2, (B, S), 0, CFG["vocab"], dtype=jnp.int32)
    token_type_1 = jnp.zeros((B, S), jnp.int32)
    token_type_2 = jax.random.randint(k_tt2, (B, S), 0, CFG["type_vocab"], dtype=jnp.int32)
    attn_mask_1 = jnp.ones((B, S), jnp.int32)
    # text2 has some padding to exercise the additive attention mask
    attn_mask_2 = jnp.concatenate(
        [jnp.ones((B, S - 2), jnp.int32), jnp.zeros((B, 2), jnp.int32)], axis=-1)

    fwd = jax.jit(functools.partial(bert_classifier_forward, cfg=CFG))
    logits = fwd(params,
                 input_ids_1, token_type_1, attn_mask_1,
                 input_ids_2, token_type_2, attn_mask_2)
    jax.block_until_ready(logits)

    assert logits.shape == (B, CFG["num_labels"])
    assert bool(jnp.all(jnp.isfinite(logits)))
    print("KERNEL_OK")
</pallas_src>

<mosaic_0001>
module attributes {stable_mosaic.version = 11 : i64} {
  func.func @_embed_ln_kernel(%arg0: i32, %arg1: memref<32x32xf32, #tpu.memory_space<vmem>>, %arg2: memref<1x32xf32, #tpu.memory_space<vmem>>, %arg3: memref<1x32xf32, #tpu.memory_space<vmem>>, %arg4: memref<32x32xf32, #tpu.memory_space<vmem>>) attributes {dimension_semantics = [#tpu.dimension_semantics<arbitrary>], iteration_bounds = array<i64: 1>, scalar_prefetch = 0 : i64, scratch_operands = 0 : i64, tpu.core_type = #tpu.core_type<tc>, window_params = [{pipeline_mode = #tpu.pipeline_mode<synchronous>, transform_indices = @transform_0, window_bounds = array<i64: 32, 32>}, {pipeline_mode = #tpu.pipeline_mode<synchronous>, transform_indices = @transform_1, window_bounds = array<i64: 1, 32>}, {pipeline_mode = #tpu.pipeline_mode<synchronous>, transform_indices = @transform_2, window_bounds = array<i64: 1, 32>}, {pipeline_mode = #tpu.pipeline_mode<synchronous>, transform_indices = @transform_3, window_bounds = array<i64: 32, 32>}]} {
    %c0 = arith.constant 0 : index
    %c0_0 = arith.constant 0 : index
    %0 = vector.load %arg1[%c0, %c0_0] : memref<32x32xf32, #tpu.memory_space<vmem>>, vector<32x32xf32>
    %c0_1 = arith.constant 0 : index
    %c0_2 = arith.constant 0 : index
    %1 = vector.load %arg2[%c0_1, %c0_2] : memref<1x32xf32, #tpu.memory_space<vmem>>, vector<1x32xf32>
    %c0_3 = arith.constant 0 : index
    %c0_4 = arith.constant 0 : index
    %2 = vector.load %arg3[%c0_3, %c0_4] : memref<1x32xf32, #tpu.memory_space<vmem>>, vector<1x32xf32>
    %cst = arith.constant dense<0.000000e+00> : vector<32xf32>
    %3 = vector.multi_reduction <add>, %0, %cst [1] : vector<32x32xf32> to vector<32xf32>
    %4 = vector.shape_cast %3 : vector<32xf32> to vector<32x1xf32>
    %cst_5 = arith.constant 3.200000e+01 : f32
    %5 = vector.broadcast %cst_5 : f32 to vector<32x1xf32>
    %6 = arith.divf %4, %5 : vector<32x1xf32>
    %7 = vector.broadcast %6 : vector<32x1xf32> to vector<32x32xf32>
    %8 = arith.subf %0, %7 : vector<32x32xf32>
    %9 = arith.mulf %8, %8 : vector<32x32xf32>
    %cst_6 = arith.constant dense<0.000000e+00> : vector<32xf32>
    %10 = vector.multi_reduction <add>, %9, %cst_6 [1] : vector<32x32xf32> to vector<32xf32>
    %11 = vector.shape_cast %10 : vector<32xf32> to vector<32x1xf32>
    %cst_7 = arith.constant 3.200000e+01 : f32
    %12 = vector.broadcast %cst_7 : f32 to vector<32x1xf32>
    %13 = arith.divf %11, %12 : vector<32x1xf32>
    %14 = vector.broadcast %6 : vector<32x1xf32> to vector<32x32xf32>
    %15 = arith.subf %0, %14 : vector<32x32xf32>
    %cst_8 = arith.constant 9.99999996E-13 : f32
    %16 = vector.broadcast %cst_8 : f32 to vector<32x1xf32>
    %17 = arith.addf %13, %16 : vector<32x1xf32>
    %18 = math.rsqrt %17 : vector<32x1xf32>
    %19 = vector.broadcast %18 : vector<32x1xf32> to vector<32x32xf32>
    %20 = arith.mulf %15, %19 : vector<32x32xf32>
    %21 = vector.broadcast %1 : vector<1x32xf32> to vector<32x32xf32>
    %22 = arith.mulf %20, %21 : vector<32x32xf32>
    %23 = vector.broadcast %2 : vector<1x32xf32> to vector<32x32xf32>
    %24 = arith.addf %22, %23 : vector<32x32xf32>
    %c0_9 = arith.constant 0 : index
    %c0_10 = arith.constant 0 : index
    %25 = vector.load %arg4[%c0_9, %c0_10] : memref<32x32xf32, #tpu.memory_space<vmem>>, vector<32x32xf32>
    tpu.vector_store %arg4[%c0_9, %c0_10], %24 {strides = array<i32>} : memref<32x32xf32, #tpu.memory_space<vmem>>, vector<32x32xf32>,
    return
  }
  func.func @transform_0(%arg0: i32) -> (i32, i32) {
    %c0_i32 = arith.constant 0 : i32
    %c0_i32_0 = arith.constant 0 : i32
    %c0_i32_1 = arith.constant 0 : i32
    return %c0_i32, %c0_i32_0 : i32, i32
  }
  func.func @transform_1(%arg0: i32) -> (i32, i32) {
    %c0_i32 = arith.constant 0 : i32
    %c0_i32_0 = arith.constant 0 : i32
    %c0_i32_1 = arith.constant 0 : i32
    return %c0_i32, %c0_i32_0 : i32, i32
  }
  func.func @transform_2(%arg0: i32) -> (i32, i32) {
    %c0_i32 = arith.constant 0 : i32
    %c0_i32_0 = arith.constant 0 : i32
    %c0_i32_1 = arith.constant 0 : i32
    return %c0_i32, %c0_i32_0 : i32, i32
  }
  func.func @transform_3(%arg0: i32) -> (i32, i32) {
    %c0_i32 = arith.constant 0 : i32
    %c0_i32_0 = arith.constant 0 : i32
    %c0_i32_1 = arith.constant 0 : i32
    return %c0_i32, %c0_i32_0 : i32, i32
  }
}

module attributes {stable_mosaic.version = 11 : i64} {
  func.func @_bert_layer_kernel(%arg0: i32, %arg1: memref<16x32xf32, #tpu.memory_space<vmem>>, %arg2: memref<2x1x8xf32, #tpu.memory_space<vmem>>, %arg3: memref<32x96xf32, #tpu.memory_space<vmem>>, %arg4: memref<1x96xf32, #tpu.memory_space<vmem>>, %arg5: memref<32x32xf32, #tpu.memory_space<vmem>>, %arg6: memref<1x32xf32, #tpu.memory_space<vmem>>, %arg7: memref<1x32xf32, #tpu.memory_space<vmem>>, %arg8: memref<1x32xf32, #tpu.memory_space<vmem>>, %arg9: memref<32x64xf32, #tpu.memory_space<vmem>>, %arg10: memref<1x64xf32, #tpu.memory_space<vmem>>, %arg11: memref<64x32xf32, #tpu.memory_space<vmem>>, %arg12: memref<1x32xf32, #tpu.memory_space<vmem>>, %arg13: memref<1x32xf32, #tpu.memory_space<vmem>>, %arg14: memref<1x32xf32, #tpu.memory_space<vmem>>, %arg15: memref<16x32xf32, #tpu.memory_space<vmem>>) attributes {dimension_semantics = [#tpu.dimension_semantics<parallel>], iteration_bounds = array<i64: 2>, scalar_prefetch = 0 : i64, scratch_operands = 0 : i64, tpu.core_type = #tpu.core_type<tc>, window_params = [{transform_indices = @transform_0, window_bounds = array<i64: 16, 32>}, {transform_indices = @transform_1, window_bounds = array<i64: 2, 1, 8>}, {pipeline_mode = #tpu.pipeline_mode<synchronous>, transform_indices = @transform_2, window_bounds = array<i64: 32, 96>}, {pipeline_mode = #tpu.pipeline_mode<synchronous>, transform_indices = @transform_3, window_bounds = array<i64: 1, 96>}, {pipeline_mode = #tpu.pipeline_mode<synchronous>, transform_indices = @transform_4, window_bounds = array<i64: 32, 32>}, {pipeline_mode = #tpu.pipeline_mode<synchronous>, transform_indices = @transform_5, window_bounds = array<i64: 1, 32>}, {pipeline_mode = #tpu.pipeline_mode<synchronous>, transform_indices = @transform_6, window_bounds = array<i64: 1, 32>}, {pipeline_mode = #tpu.pipeline_mode<synchronous>, transform_indices = @transform_7, window_bounds = array<i64: 1, 32>}, {pipeline_mode = #tpu.pipeline_mode<synchronous>, transform_indices = @transform_8, window_bounds = array<i64: 32, 64>}, {pipeline_mode = #tpu.pipeline_mode<synchronous>, transform_indices = @transform_9, window_bounds = array<i64: 1, 64>}, {pipeline_mode = #tpu.pipeline_mode<synchronous>, transform_indices = @transform_10, window_bounds = array<i64: 64, 32>}, {pipeline_mode = #tpu.pipeline_mode<synchronous>, transform_indices = @transform_11, window_bounds = array<i64: 1, 32>}, {pipeline_mode = #tpu.pipeline_mode<synchronous>, transform_indices = @transform_12, window_bounds = array<i64: 1, 32>}, {pipeline_mode = #tpu.pipeline_mode<synchronous>, transform_indices = @transform_13, window_bounds = array<i64: 1, 32>}, {transform_indices = @transform_14, window_bounds = array<i64: 16, 32>}]} {
    %c0 = arith.constant 0 : index
    %c0_0 = arith.constant 0 : index
    %0 = vector.load %arg1[%c0, %c0_0] : memref<16x32xf32, #tpu.memory_space<vmem>>, vector<16x32xf32>
    %c0_1 = arith.constant 0 : index
    %c0_2 = arith.constant 0 : index
    %c0_3 = arith.constant 0 : index
    %1 = vector.load %arg2[%c0_1, %c0_2, %c0_3] : memref<2x1x8xf32, #tpu.memory_space<vmem>>, vector<2x1x8xf32>
    %c0_4 = arith.constant 0 : index
    %c0_5 = arith.constant 0 : index
    %2 = vector.load %arg3[%c0_4, %c0_5] : memref<32x96xf32, #tpu.memory_space<vmem>>, vector<32x96xf32>
    %cst = arith.constant dense<0.000000e+00> : vector<16x96xf32>
    %3 = tpu.matmul %0, %2, %cst {dimension_numbers = #tpu.dot_dimension_numbers<[1], [0], [0], [1], [0, 0, 1, 1], [], []>} : vector<16x32xf32>, vector<32x96xf32>, vector<16x96xf32> -> vector<16x96xf32>
    %c0_6 = arith.constant 0 : index
    %c0_7 = arith.constant 0 : index
    %4 = vector.load %arg4[%c0_6, %c0_7] : memref<1x96xf32, #tpu.memory_space<vmem>>, vector<1x96xf32>
    %5 = vector.broadcast %4 : vector<1x96xf32> to vector<16x96xf32>
    %6 = arith.addf %3, %5 : vector<16x96xf32>
    %c0_8 = arith.constant 0 : index
    %c0_9 = arith.constant 0 : index
    %7 = vector.load %arg5[%c0_8, %c0_9] : memref<32x32xf32, #tpu.memory_space<vmem>>, vector<32x32xf32>
    %cst_10 = arith.constant 0.000000e+00 : f32
    %8 = vector.broadcast %cst_10 : f32 to vector<16x32xf32>
    %9 = vector.extract_strided_slice %6 {offsets = [0, 0], sizes = [16, 16], strides = [1, 1]} : vector<16x96xf32> to vector<16x16xf32>
    %10 = vector.shape_cast %9 : vector<16x16xf32> to vector<2x8x16xf32>
    %11 = vector.extract_strided_slice %6 {offsets = [0, 32], sizes = [16, 16], strides = [1, 1]} : vector<16x96xf32> to vector<16x16xf32>
    %12 = vector.shape_cast %11 : vector<16x16xf32> to vector<2x8x16xf32>
    %13 = vector.extract_strided_slice %6 {offsets = [0, 64], sizes = [16, 16], strides = [1, 1]} : vector<16x96xf32> to vector<16x16xf32>
    %14 = vector.shape_cast %13 : vector<16x16xf32> to vector<2x8x16xf32>
    "tpu.trace_start"() <{level = 10 : i32, message = "bqd,bkd->bqk"}> : () -> ()
    %cst_11 = arith.constant dense<0.000000e+00> : vector<2x8x8xf32>
    %15 = tpu.matmul %10, %12, %cst_11 {dimension_numbers = #tpu.dot_dimension_numbers<[2], [2], [1], [1], [0, 0, 0, 1, 1, 1], [0], [0]>} : vector<2x8x16xf32>, vector<2x8x16xf32>, vector<2x8x8xf32> -> vector<2x8x8xf32>
    "tpu.trace_stop"() : () -> ()
    %cst_12 = arith.constant 2.500000e-01 : f32
    %16 = vector.broadcast %cst_12 : f32 to vector<2x8x8xf32>
    %17 = arith.mulf %15, %16 : vector<2x8x8xf32>
    %18 = vector.broadcast %1 : vector<2x1x8xf32> to vector<2x8x8xf32>
    %19 = arith.addf %17, %18 : vector<2x8x8xf32>
    %cst_13 = arith.constant dense<0xFF800000> : vector<2x8xf32>
    %20 = vector.multi_reduction <maximumf>, %19, %cst_13 [2] : vector<2x8x8xf32> to vector<2x8xf32>
    %21 = vector.shape_cast %20 : vector<2x8xf32> to vector<2x8x1xf32>
    %22 = vector.broadcast %21 : vector<2x8x1xf32> to vector<2x8x8xf32>
    %23 = arith.subf %19, %22 : vector<2x8x8xf32>
    %24 = math.exp %23 : vector<2x8x8xf32>
    %cst_14 = arith.constant dense<0.000000e+00> : vector<2x8xf32>
    %25 = vector.multi_reduction <add>, %24, %cst_14 [2] : vector<2x8x8xf32> to vector<2x8xf32>
    %26 = vector.shape_cast %25 : vector<2x8xf32> to vector<2x8x1xf32>
    %27 = vector.broadcast %26 : vector<2x8x1xf32> to vector<2x8x8xf32>
    %28 = arith.divf %24, %27 : vector<2x8x8xf32>
    "tpu.trace_start"() <{level = 10 : i32, message = "bqk,bkd->bqd"}> : () -> ()
    %cst_15 = arith.constant dense<0.000000e+00> : vector<2x8x16xf32>
    %29 = tpu.matmul %28, %14, %cst_15 {dimension_numbers = #tpu.dot_dimension_numbers<[2], [1], [1], [2], [0, 0, 0, 1, 1, 2], [0], [0]>} : vector<2x8x8xf32>, vector<2x8x16xf32>, vector<2x8x16xf32> -> vector<2x8x16xf32>
    "tpu.trace_stop"() : () -> ()
    %30 = vector.shape_cast %29 : vector<2x8x16xf32> to vector<16x16xf32>
    %31 = vector.extract_strided_slice %7 {offsets = [0, 0], sizes = [16, 32], strides = [1, 1]} : vector<32x32xf32> to vector<16x32xf32>
    %cst_16 = arith.constant dense<0.000000e+00> : vector<16x32xf32>
    %32 = tpu.matmul %30, %31, %cst_16 {dimension_numbers = #tpu.dot_dimension_numbers<[1], [0], [0], [1], [0, 0, 1, 1], [], []>} : vector<16x16xf32>, vector<16x32xf32>, vector<16x32xf32> -> vector<16x32xf32>
    %33 = arith.addf %8, %32 : vector<16x32xf32>
    %34 = vector.extract_strided_slice %6 {offsets = [0, 16], sizes = [16, 16], strides = [1, 1]} : vector<16x96xf32> to vector<16x16xf32>
    %35 = vector.shape_cast %34 : vector<16x16xf32> to vector<2x8x16xf32>
    %36 = vector.extract_strided_slice %6 {offsets = [0, 48], sizes = [16, 16], strides = [1, 1]} : vector<16x96xf32> to vector<16x16xf32>
    %37 = vector.shape_cast %36 : vector<16x16xf32> to vector<2x8x16xf32>
    %38 = vector.extract_strided_slice %6 {offsets = [0, 80], sizes = [16, 16], strides = [1, 1]} : vector<16x96xf32> to vector<16x16xf32>
    %39 = vector.shape_cast %38 : vector<16x16xf32> to vector<2x8x16xf32>
    "tpu.trace_start"() <{level = 10 : i32, message = "bqd,bkd->bqk"}> : () -> ()
    %cst_17 = arith.constant dense<0.000000e+00> : vector<2x8x8xf32>
    %40 = tpu.matmul %35, %37, %cst_17 {dimension_numbers = #tpu.dot_dimension_numbers<[2], [2], [1], [1], [0, 0, 0, 1, 1, 1], [0], [0]>} : vector<2x8x16xf32>, vector<2x8x16xf32>, vector<2x8x8xf32> -> vector<2x8x8xf32>
    "tpu.trace_stop"() : () -> ()
    %cst_18 = arith.constant 2.500000e-01 : f32
    %41 = vector.broadcast %cst_18 : f32 to vector<2x8x8xf32>
    %42 = arith.mulf %40, %41 : vector<2x8x8xf32>
    %43 = vector.broadcast %1 : vector<2x1x8xf32> to vector<2x8x8xf32>
    %44 = arith.addf %42, %43 : vector<2x8x8xf32>
    %cst_19 = arith.constant dense<0xFF800000> : vector<2x8xf32>
    %45 = vector.multi_reduction <maximumf>, %44, %cst_19 [2] : vector<2x8x8xf32> to vector<2x8xf32>
    %46 = vector.shape_cast %45 : vector<2x8xf32> to vector<2x8x1xf32>
    %47 = vector.broadcast %46 : vector<2x8x1xf32> to vector<2x8x8xf32>
    %48 = arith.subf %44, %47 : vector<2x8x8xf32>
    %49 = math.exp %48 : vector<2x8x8xf32>
    %cst_20 = arith.constant dense<0.000000e+00> : vector<2x8xf32>
    %50 = vector.multi_reduction <add>, %49, %cst_20 [2] : vector<2x8x8xf32> to vector<2x8xf32>
    %51 = vector.shape_cast %50 : vector<2x8xf32> to vector<2x8x1xf32>
    %52 = vector.broadcast %51 : vector<2x8x1xf32> to vector<2x8x8xf32>
    %53 = arith.divf %49, %52 : vector<2x8x8xf32>
    "tpu.trace_start"() <{level = 10 : i32, message = "bqk,bkd->bqd"}> : () -> ()
    %cst_21 = arith.constant dense<0.000000e+00> : vector<2x8x16xf32>
    %54 = tpu.matmul %53, %39, %cst_21 {dimension_numbers = #tpu.dot_dimension_numbers<[2], [1], [1], [2], [0, 0, 0, 1, 1, 2], [0], [0]>} : vector<2x8x8xf32>, vector<2x8x16xf32>, vector<2x8x16xf32> -> vector<2x8x16xf32>
    "tpu.trace_stop"() : () -> ()
    %55 = vector.shape_cast %54 : vector<2x8x16xf32> to vector<16x16xf32>
    %56 = vector.extract_strided_slice %7 {offsets = [16, 0], sizes = [16, 32], strides = [1, 1]} : vector<32x32xf32> to vector<16x32xf32>
    %cst_22 = arith.constant dense<0.000000e+00> : vector<16x32xf32>
    %57 = tpu.matmul %55, %56, %cst_22 {dimension_numbers = #tpu.dot_dimension_numbers<[1], [0], [0], [1], [0, 0, 1, 1], [], []>} : vector<16x16xf32>, vector<16x32xf32>, vector<16x32xf32> -> vector<16x32xf32>
    %58 = arith.addf %33, %57 : vector<16x32xf32>
    %c0_23 = arith.constant 0 : index
    %c0_24 = arith.constant 0 : index
    %59 = vector.load %arg6[%c0_23, %c0_24] : memref<1x32xf32, #tpu.memory_space<vmem>>, vector<1x32xf32>
    %60 = vector.broadcast %59 : vector<1x32xf32> to vector<16x32xf32>
    %61 = arith.addf %58, %60 : vector<16x32xf32>
    %62 = arith.addf %61, %0 : vector<16x32xf32>
    %c0_25 = arith.constant 0 : index
    %c0_26 = arith.constant 0 : index
    %63 = vector.load %arg7[%c0_25, %c0_26] : memref<1x32xf32, #tpu.memory_space<vmem>>, vector<1x32xf32>
    %c0_27 = arith.constant 0 : index
    %c0_28 = arith.constant 0 : index
    %64 = vector.load %arg8[%c0_27, %c0_28] : memref<1x32xf32, #tpu.memory_space<vmem>>, vector<1x32xf32>
    %cst_29 = arith.constant dense<0.000000e+00> : vector<16xf32>
    %65 = vector.multi_reduction <add>, %62, %cst_29 [1] : vector<16x32xf32> to vector<16xf32>
    %66 = vector.shape_cast %65 : vector<16xf32> to vector<16x1xf32>
    %cst_30 = arith.constant 3.200000e+01 : f32
    %67 = vector.broadcast %cst_30 : f32 to vector<16x1xf32>
    %68 = arith.divf %66, %67 : vector<16x1xf32>
    %69 = vector.broadcast %68 : vector<16x1xf32> to vector<16x32xf32>
    %70 = arith.subf %62, %69 : vector<16x32xf32>
    %71 = arith.mulf %70, %70 : vector<16x32xf32>
    %cst_31 = arith.constant dense<0.000000e+00> : vector<16xf32>
    %72 = vector.multi_reduction <add>, %71, %cst_31 [1] : vector<16x32xf32> to vector<16xf32>
    %73 = vector.shape_cast %72 : vector<16xf32> to vector<16x1xf32>
    %cst_32 = arith.constant 3.200000e+01 : f32
    %74 = vector.broadcast %cst_32 : f32 to vector<16x1xf32>
    %75 = arith.divf %73, %74 : vector<16x1xf32>
    %76 = vector.broadcast %68 : vector<16x1xf32> to vector<16x32xf32>
    %77 = arith.subf %62, %76 : vector<16x32xf32>
    %cst_33 = arith.constant 9.99999996E-13 : f32
    %78 = vector.broadcast %cst_33 : f32 to vector<16x1xf32>
    %79 = arith.addf %75, %78 : vector<16x1xf32>
    %80 = math.rsqrt %79 : vector<16x1xf32>
    %81 = vector.broadcast %80 : vector<16x1xf32> to vector<16x32xf32>
    %82 = arith.mulf %77, %81 : vector<16x32xf32>
    %83 = vector.broadcast %63 : vector<1x32xf32> to vector<16x32xf32>
    %84 = arith.mulf %82, %83 : vector<16x32xf32>
    %85 = vector.broadcast %64 : vector<1x32xf32> to vector<16x32xf32>
    %86 = arith.addf %84, %85 : vector<16x32xf32>
    %c0_34 = arith.constant 0 : index
    %c0_35 = arith.constant 0 : index
    %87 = vector.load %arg9[%c0_34, %c0_35] : memref<32x64xf32, #tpu.memory_space<vmem>>, vector<32x64xf32>
    %cst_36 = arith.constant dense<0.000000e+00> : vector<16x64xf32>
    %88 = tpu.matmul %86, %87, %cst_36 {dimension_numbers = #tpu.dot_dimension_numbers<[1], [0], [0], [1], [0, 0, 1, 1], [], []>} : vector<16x32xf32>, vector<32x64xf32>, vector<16x64xf32> -> vector<16x64xf32>
    %c0_37 = arith.constant 0 : index
    %c0_38 = arith.constant 0 : index
    %89 = vector.load %arg10[%c0_37, %c0_38] : memref<1x64xf32, #tpu.memory_space<vmem>>, vector<1x64xf32>
    %90 = vector.broadcast %89 : vector<1x64xf32> to vector<16x64xf32>
    %91 = arith.addf %88, %90 : vector<16x64xf32>
    %92 = arith.mulf %91, %91 : vector<16x64xf32>
    %93 = arith.mulf %91, %92 : vector<16x64xf32>
    %cst_39 = arith.constant 4.471500e-02 : f32
    %94 = vector.broadcast %cst_39 : f32 to vector<16x64xf32>
    %95 = arith.mulf %94, %93 : vector<16x64xf32>
    %96 = arith.addf %91, %95 : vector<16x64xf32>
    %cst_40 = arith.constant 0.797884583 : f32
    %97 = vector.broadcast %cst_40 : f32 to vector<16x64xf32>
    %98 = arith.mulf %97, %96 : vector<16x64xf32>
    %99 = math.tanh %98 : vector<16x64xf32>
    %cst_41 = arith.constant 1.000000e+00 : f32
    %100 = vector.broadcast %cst_41 : f32 to vector<16x64xf32>
    %101 = arith.addf %100, %99 : vector<16x64xf32>
    %cst_42 = arith.constant 5.000000e-01 : f32
    %102 = vector.broadcast %cst_42 : f32 to vector<16x64xf32>
    %103 = arith.mulf %102, %101 : vector<16x64xf32>
    %104 = arith.mulf %91, %103 : vector<16x64xf32>
    %c0_43 = arith.constant 0 : index
    %c0_44 = arith.constant 0 : index
    %105 = vector.load %arg11[%c0_43, %c0_44] : memref<64x32xf32, #tpu.memory_space<vmem>>, vector<64x32xf32>
    %cst_45 = arith.constant dense<0.000000e+00> : vector<16x32xf32>
    %106 = tpu.matmul %104, %105, %cst_45 {dimension_numbers = #tpu.dot_dimension_numbers<[1], [0], [0], [1], [0, 0, 1, 1], [], []>} : vector<16x64xf32>, vector<64x32xf32>, vector<16x32xf32> -> vector<16x32xf32>
    %c0_46 = arith.constant 0 : index
    %c0_47 = arith.constant 0 : index
    %107 = vector.load %arg12[%c0_46, %c0_47] : memref<1x32xf32, #tpu.memory_space<vmem>>, vector<1x32xf32>
    %108 = vector.broadcast %107 : vector<1x32xf32> to vector<16x32xf32>
    %109 = arith.addf %106, %108 : vector<16x32xf32>
    %110 = arith.addf %109, %86 : vector<16x32xf32>
    %c0_48 = arith.constant 0 : index
    %c0_49 = arith.constant 0 : index
    %111 = vector.load %arg13[%c0_48, %c0_49] : memref<1x32xf32, #tpu.memory_space<vmem>>, vector<1x32xf32>
    %c0_50 = arith.constant 0 : index
    %c0_51 = arith.constant 0 : index
    %112 = vector.load %arg14[%c0_50, %c0_51] : memref<1x32xf32, #tpu.memory_space<vmem>>, vector<1x32xf32>
    %cst_52 = arith.constant dense<0.000000e+00> : vector<16xf32>
    %113 = vector.multi_reduction <add>, %110, %cst_52 [1] : vector<16x32xf32> to vector<16xf32>
    %114 = vector.shape_cast %113 : vector<16xf32> to vector<16x1xf32>
    %cst_53 = arith.constant 3.200000e+01 : f32
    %115 = vector.broadcast %cst_53 : f32 to vector<16x1xf32>
    %116 = arith.divf %114, %115 : vector<16x1xf32>
    %117 = vector.broadcast %116 : vector<16x1xf32> to vector<16x32xf32>
    %118 = arith.subf %110, %117 : vector<16x32xf32>
    %119 = arith.mulf %118, %118 : vector<16x32xf32>
    %cst_54 = arith.constant dense<0.000000e+00> : vector<16xf32>
    %120 = vector.multi_reduction <add>, %119, %cst_54 [1] : vector<16x32xf32> to vector<16xf32>
    %121 = vector.shape_cast %120 : vector<16xf32> to vector<16x1xf32>
    %cst_55 = arith.constant 3.200000e+01 : f32
    %122 = vector.broadcast %cst_55 : f32 to vector<16x1xf32>
    %123 = arith.divf %121, %122 : vector<16x1xf32>
    %124 = vector.broadcast %116 : vector<16x1xf32> to vector<16x32xf32>
    %125 = arith.subf %110, %124 : vector<16x32xf32>
    %cst_56 = arith.constant 9.99999996E-13 : f32
    %126 = vector.broadcast %cst_56 : f32 to vector<16x1xf32>
    %127 = arith.addf %123, %126 : vector<16x1xf32>
    %128 = math.rsqrt %127 : vector<16x1xf32>
    %129 = vector.broadcast %128 : vector<16x1xf32> to vector<16x32xf32>
    %130 = arith.mulf %125, %129 : vector<16x32xf32>
    %131 = vector.broadcast %111 : vector<1x32xf32> to vector<16x32xf32>
    %132 = arith.mulf %130, %131 : vector<16x32xf32>
    %133 = vector.broadcast %112 : vector<1x32xf32> to vector<16x32xf32>
    %134 = arith.addf %132, %133 : vector<16x32xf32>
    %c0_57 = arith.constant 0 : index
    %c0_58 = arith.constant 0 : index
    %135 = vector.load %arg15[%c0_57, %c0_58] : memref<16x32xf32, #tpu.memory_space<vmem>>, vector<16x32xf32>
    tpu.vector_store %arg15[%c0_57, %c0_58], %134 {strides = array<i32>} : memref<16x32xf32, #tpu.memory_space<vmem>>, vector<16x32xf32>,
    return
  }
  func.func @transform_0(%arg0: i32) -> (i32, i32) {
    %c0_i32 = arith.constant 0 : i32
    %c0_i32_0 = arith.constant 0 : i32
    return %arg0, %c0_i32 : i32, i32
  }
  func.func @transform_1(%arg0: i32) -> (i32, i32, i32) {
    %c0_i32 = arith.constant 0 : i32
    %c0_i32_0 = arith.constant 0 : i32
    %c0_i32_1 = arith.constant 0 : i32
    return %arg0, %c0_i32, %c0_i32_0 : i32, i32, i32
  }
  func.func @transform_2(%arg0: i32) -> (i32, i32) {
    %c0_i32 = arith.constant 0 : i32
    %c0_i32_0 = arith.constant 0 : i32
    %c0_i32_1 = arith.constant 0 : i32
    return %c0_i32, %c0_i32_0 : i32, i32
  }
  func.func @transform_3(%arg0: i32) -> (i32, i32) {
    %c0_i32 = arith.constant 0 : i32
    %c0_i32_0 = arith.constant 0 : i32
    %c0_i32_1 = arith.constant 0 : i32
    return %c0_i32, %c0_i32_0 : i32, i32
  }
  func.func @transform_4(%arg0: i32) -> (i32, i32) {
    %c0_i32 = arith.constant 0 : i32
    %c0_i32_0 = arith.constant 0 : i32
    %c0_i32_1 = arith.constant 0 : i32
    return %c0_i32, %c0_i32_0 : i32, i32
  }
  func.func @transform_5(%arg0: i32) -> (i32, i32) {
    %c0_i32 = arith.constant 0 : i32
    %c0_i32_0 = arith.constant 0 : i32
    %c0_i32_1 = arith.constant 0 : i32
    return %c0_i32, %c0_i32_0 : i32, i32
  }
  func.func @transform_6(%arg0: i32) -> (i32, i32) {
    %c0_i32 = arith.constant 0 : i32
    %c0_i32_0 = arith.constant 0 : i32
    %c0_i32_1 = arith.constant 0 : i32
    return %c0_i32, %c0_i32_0 : i32, i32
  }
  func.func @transform_7(%arg0: i32) -> (i32, i32) {
    %c0_i32 = arith.constant 0 : i32
    %c0_i32_0 = arith.constant 0 : i32
    %c0_i32_1 = arith.constant 0 : i32
    return %c0_i32, %c0_i32_0 : i32, i32
  }
  func.func @transform_8(%arg0: i32) -> (i32, i32) {
    %c0_i32 = arith.constant 0 : i32
    %c0_i32_0 = arith.constant 0 : i32
    %c0_i32_1 = arith.constant 0 : i32
    return %c0_i32, %c0_i32_0 : i32, i32
  }
  func.func @transform_9(%arg0: i32) -> (i32, i32) {
    %c0_i32 = arith.constant 0 : i32
    %c0_i32_0 = arith.constant 0 : i32
    %c0_i32_1 = arith.constant 0 : i32
    return %c0_i32, %c0_i32_0 : i32, i32
  }
  func.func @transform_10(%arg0: i32) -> (i32, i32) {
    %c0_i32 = arith.constant 0 : i32
    %c0_i32_0 = arith.constant 0 : i32
    %c0_i32_1 = arith.constant 0 : i32
    return %c0_i32, %c0_i32_0 : i32, i32
  }
  func.func @transform_11(%arg0: i32) -> (i32, i32) {
    %c0_i32 = arith.constant 0 : i32
    %c0_i32_0 = arith.constant 0 : i32
    %c0_i32_1 = arith.constant 0 : i32
    return %c0_i32, %c0_i32_0 : i32, i32
  }
  func.func @transform_12(%arg0: i32) -> (i32, i32) {
    %c0_i32 = arith.constant 0 : i32
    %c0_i32_0 = arith.constant 0 : i32
    %c0_i32_1 = arith.constant 0 : i32
    return %c0_i32, %c0_i32_0 : i32, i32
  }
  func.func @transform_13(%arg0: i32) -> (i32, i32) {
    %c0_i32 = arith.constant 0 : i32
    %c0_i32_0 = arith.constant 0 : i32
    %c0_i32_1 = arith.constant 0 : i32
    return %c0_i32, %c0_i32_0 : i32, i32
  }
  func.func @transform_14(%arg0: i32) -> (i32, i32) {
    %c0_i32 = arith.constant 0 : i32
    %c0_i32_0 = arith.constant 0 : i32
    return %arg0, %c0_i32 : i32, i32
  }
}

module attributes {stable_mosaic.version = 11 : i64} {
  func.func @_pool_head_kernel(%arg0: i32, %arg1: memref<2x32xf32, #tpu.memory_space<vmem>>, %arg2: memref<2x32xf32, #tpu.memory_space<vmem>>, %arg3: memref<32x32xf32, #tpu.memory_space<vmem>>, %arg4: memref<1x32xf32, #tpu.memory_space<vmem>>, %arg5: memref<32x2xf32, #tpu.memory_space<vmem>>, %arg6: memref<32x2xf32, #tpu.memory_space<vmem>>, %arg7: memref<32x2xf32, #tpu.memory_space<vmem>>, %arg8: memref<1x2xf32, #tpu.memory_space<vmem>>, %arg9: memref<2x2xf32, #tpu.memory_space<vmem>>) attributes {dimension_semantics = [#tpu.dimension_semantics<arbitrary>], iteration_bounds = array<i64: 1>, scalar_prefetch = 0 : i64, scratch_operands = 0 : i64, tpu.core_type = #tpu.core_type<tc>, window_params = [{pipeline_mode = #tpu.pipeline_mode<synchronous>, transform_indices = @transform_0, window_bounds = array<i64: 2, 32>}, {pipeline_mode = #tpu.pipeline_mode<synchronous>, transform_indices = @transform_1, window_bounds = array<i64: 2, 32>}, {pipeline_mode = #tpu.pipeline_mode<synchronous>, transform_indices = @transform_2, window_bounds = array<i64: 32, 32>}, {pipeline_mode = #tpu.pipeline_mode<synchronous>, transform_indices = @transform_3, window_bounds = array<i64: 1, 32>}, {pipeline_mode = #tpu.pipeline_mode<synchronous>, transform_indices = @transform_4, window_bounds = array<i64: 32, 2>}, {pipeline_mode = #tpu.pipeline_mode<synchronous>, transform_indices = @transform_5, window_bounds = array<i64: 32, 2>}, {pipeline_mode = #tpu.pipeline_mode<synchronous>, transform_indices = @transform_6, window_bounds = array<i64: 32, 2>}, {pipeline_mode = #tpu.pipeline_mode<synchronous>, transform_indices = @transform_7, window_bounds = array<i64: 1, 2>}, {pipeline_mode = #tpu.pipeline_mode<synchronous>, transform_indices = @transform_8, window_bounds = array<i64: 2, 2>}]} {
    %c0 = arith.constant 0 : index
    %c0_0 = arith.constant 0 : index
    %0 = vector.load %arg3[%c0, %c0_0] : memref<32x32xf32, #tpu.memory_space<vmem>>, vector<32x32xf32>
    %c0_1 = arith.constant 0 : index
    %c0_2 = arith.constant 0 : index
    %1 = vector.load %arg4[%c0_1, %c0_2] : memref<1x32xf32, #tpu.memory_space<vmem>>, vector<1x32xf32>
    %c0_3 = arith.constant 0 : index
    %c0_4 = arith.constant 0 : index
    %2 = vector.load %arg1[%c0_3, %c0_4] : memref<2x32xf32, #tpu.memory_space<vmem>>, vector<2x32xf32>
    %cst = arith.constant dense<0.000000e+00> : vector<2x32xf32>
    %3 = tpu.matmul %2, %0, %cst {dimension_numbers = #tpu.dot_dimension_numbers<[1], [0], [0], [1], [0, 0, 1, 1], [], []>} : vector<2x32xf32>, vector<32x32xf32>, vector<2x32xf32> -> vector<2x32xf32>
    %4 = vector.broadcast %1 : vector<1x32xf32> to vector<2x32xf32>
    %5 = arith.addf %3, %4 : vector<2x32xf32>
    %6 = math.tanh %5 : vector<2x32xf32>
    %c0_5 = arith.constant 0 : index
    %c0_6 = arith.constant 0 : index
    %7 = vector.load %arg2[%c0_5, %c0_6] : memref<2x32xf32, #tpu.memory_space<vmem>>, vector<2x32xf32>
    %cst_7 = arith.constant dense<0.000000e+00> : vector<2x32xf32>
    %8 = tpu.matmul %7, %0, %cst_7 {dimension_numbers = #tpu.dot_dimension_numbers<[1], [0], [0], [1], [0, 0, 1, 1], [], []>} : vector<2x32xf32>, vector<32x32xf32>, vector<2x32xf32> -> vector<2x32xf32>
    %9 = vector.broadcast %1 : vector<1x32xf32> to vector<2x32xf32>
    %10 = arith.addf %8, %9 : vector<2x32xf32>
    %11 = math.tanh %10 : vector<2x32xf32>
    %12 = arith.subf %6, %11 : vector<2x32xf32>
    %13 = math.absf %12 : vector<2x32xf32>
    %c0_8 = arith.constant 0 : index
    %c0_9 = arith.constant 0 : index
    %14 = vector.load %arg5[%c0_8, %c0_9] : memref<32x2xf32, #tpu.memory_space<vmem>>, vector<32x2xf32>
    %cst_10 = arith.constant dense<0.000000e+00> : vector<2x2xf32>
    %15 = tpu.matmul %6, %14, %cst_10 {dimension_numbers = #tpu.dot_dimension_numbers<[1], [0], [0], [1], [0, 0, 1, 1], [], []>} : vector<2x32xf32>, vector<32x2xf32>, vector<2x2xf32> -> vector<2x2xf32>
    %c0_11 = arith.constant 0 : index
    %c0_12 = arith.constant 0 : index
    %16 = vector.load %arg6[%c0_11, %c0_12] : memref<32x2xf32, #tpu.memory_space<vmem>>, vector<32x2xf32>
    %cst_13 = arith.constant dense<0.000000e+00> : vector<2x2xf32>
    %17 = tpu.matmul %11, %16, %cst_13 {dimension_numbers = #tpu.dot_dimension_numbers<[1], [0], [0], [1], [0, 0, 1, 1], [], []>} : vector<2x32xf32>, vector<32x2xf32>, vector<2x2xf32> -> vector<2x2xf32>
    %18 = arith.addf %15, %17 : vector<2x2xf32>
    %c0_14 = arith.constant 0 : index
    %c0_15 = arith.constant 0 : index
    %19 = vector.load %arg7[%c0_14, %c0_15] : memref<32x2xf32, #tpu.memory_space<vmem>>, vector<32x2xf32>
    %cst_16 = arith.constant dense<0.000000e+00> : vector<2x2xf32>
    %20 = tpu.matmul %13, %19, %cst_16 {dimension_numbers = #tpu.dot_dimension_numbers<[1], [0], [0], [1], [0, 0, 1, 1], [], []>} : vector<2x32xf32>, vector<32x2xf32>, vector<2x2xf32> -> vector<2x2xf32>
    %21 = arith.addf %18, %20 : vector<2x2xf32>
    %c0_17 = arith.constant 0 : index
    %c0_18 = arith.constant 0 : index
    %22 = vector.load %arg8[%c0_17, %c0_18] : memref<1x2xf32, #tpu.memory_space<vmem>>, vector<1x2xf32>
    %23 = vector.broadcast %22 : vector<1x2xf32> to vector<2x2xf32>
    %24 = arith.addf %21, %23 : vector<2x2xf32>
    %c0_19 = arith.constant 0 : index
    %c0_20 = arith.constant 0 : index
    %25 = vector.load %arg9[%c0_19, %c0_20] : memref<2x2xf32, #tpu.memory_space<vmem>>, vector<2x2xf32>
    tpu.vector_store %arg9[%c0_19, %c0_20], %24 {strides = array<i32>} : memref<2x2xf32, #tpu.memory_space<vmem>>, vector<2x2xf32>,
    return
  }
  func.func @transform_0(%arg0: i32) -> (i32, i32) {
    %c0_i32 = arith.constant 0 : i32
    %c0_i32_0 = arith.constant 0 : i32
    %c0_i32_1 = arith.constant 0 : i32
    return %c0_i32, %c0_i32_0 : i32, i32
  }
  func.func @transform_1(%arg0: i32) -> (i32, i32) {
    %c0_i32 = arith.constant 0 : i32
    %c0_i32_0 = arith.constant 0 : i32
    %c0_i32_1 = arith.constant 0 : i32
    return %c0_i32, %c0_i32_0 : i32, i32
  }
  func.func @transform_2(%arg0: i32) -> (i32, i32) {
    %c0_i32 = arith.constant 0 : i32
    %c0_i32_0 = arith.constant 0 : i32
    %c0_i32_1 = arith.constant 0 : i32
    return %c0_i32, %c0_i32_0 : i32, i32
  }
  func.func @transform_3(%arg0: i32) -> (i32, i32) {
    %c0_i32 = arith.constant 0 : i32
    %c0_i32_0 = arith.constant 0 : i32
    %c0_i32_1 = arith.constant 0 : i32
    return %c0_i32, %c0_i32_0 : i32, i32
  }
  func.func @transform_4(%arg0: i32) -> (i32, i32) {
    %c0_i32 = arith.constant 0 : i32
    %c0_i32_0 = arith.constant 0 : i32
    %c0_i32_1 = arith.constant 0 : i32
    return %c0_i32, %c0_i32_0 : i32, i32
  }
  func.func @transform_5(%arg0: i32) -> (i32, i32) {
    %c0_i32 = arith.constant 0 : i32
    %c0_i32_0 = arith.constant 0 : i32
    %c0_i32_1 = arith.constant 0 : i32
    return %c0_i32, %c0_i32_0 : i32, i32
  }
  func.func @transform_6(%arg0: i32) -> (i32, i32) {
    %c0_i32 = arith.constant 0 : i32
    %c0_i32_0 = arith.constant 0 : i32
    %c0_i32_1 = arith.constant 0 : i32
    return %c0_i32, %c0_i32_0 : i32, i32
  }
  func.func @transform_7(%arg0: i32) -> (i32, i32) {
    %c0_i32 = arith.constant 0 : i32
    %c0_i32_0 = arith.constant 0 : i32
    %c0_i32_1 = arith.constant 0 : i32
    return %c0_i32, %c0_i32_0 : i32, i32
  }
  func.func @transform_8(%arg0: i32) -> (i32, i32) {
    %c0_i32 = arith.constant 0 : i32
    %c0_i32_0 = arith.constant 0 : i32
    %c0_i32_1 = arith.constant 0 : i32
    return %c0_i32, %c0_i32_0 : i32, i32
  }
}

</mosaic_0001>

<bundles_post_ra>
// kernel: bert_classifier_forward.4
= control target key start
LH: loop header
LB: loop body
LE: loop exit
PB: predicated region body
PF: predicated region fallthrough
CT: control target
= control target key end

     0   :  { %vm20_vm0 = vcmask 261120   ;;  %s174_s0 = inlined_call_operand.vmem [shape: f32[32,32], index: 0, kind: input, shape index: {}]   ;;  %s175_s1 = inlined_call_operand.vmem [shape: f32[1,32], index: 1, kind: input, shape index: {}]   ;;  %s176_s2 = inlined_call_operand.vmem [shape: f32[1,32], index: 2, kind: input, shape index: {}]   ;;  %s177_s3 = inlined_call_operand.vmem [shape: f32[32,32], index: 3, kind: output, shape index: {}]  }
   0x1   :  { %v14_v0 = vld [vmem:[%s174_s0] sm:$0xff]  ;;  %v16_v1 = vld [vmem:[%s174_s0 + $0x10] sm:$0xff]  ;;  %v15_v2 = vld [vmem:[%s174_s0 + $0x8] sm:$0xff] }
   0x2   :  { %v21_v3 = vsel %vm20_vm0, %v14_v0, 0.0  ;;  %v27_v4 = vsel %vm20_vm0, %v16_v1, 0.0  ;;  %v17_v5 = vld [vmem:[%s174_s0 + $0x18] sm:$0xff]  ;;  %v24_v6 = vsel %vm20_vm0, %v15_v2, 0.0  ;;  %v102_v41 = vld [vmem:[%s175_s1] ss:$0 sm:$0xff] }
   0x3   :  { %22 = vadd.xlane.f32.xlu0 %v21_v3  ;;  %28 = vadd.xlane.f32.xlu1 %v27_v4  ;;  %v30_v7 = vsel %vm20_vm0, %v17_v5, 0.0  ;;  %v103_v43 = vld [vmem:[%s176_s2] ss:$0 sm:$0xff] }
   0x7   :  { %25 = vadd.xlane.f32.xlu0 %v24_v6  ;;  %31 = vadd.xlane.f32.xlu1 %v30_v7 }
  0x90   :  { %v23_v8 = vpop.xlane.xlu0 %22  ;;  %v29_v9 = vpop.xlane.xlu1 %28 }
  0x91   :  { %v34_v10 = vmul.f32 0.03125, %v23_v8  ;;  %v36_v11 = vmul.f32 0.03125, %v29_v9 }
  0x93   :  { %v38_v12 = vsub.f32 %v14_v0, %v34_v10  ;;  %v40_v13 = vsub.f32 %v16_v1, %v36_v11 }
  0x94   :  { %v26_v14 = vpop.xlane.xlu0 %25  ;;  %v32_v15 = vpop.xlane.xlu1 %31 }
  0x95   :  { %v35_v16 = vmul.f32 0.03125, %v26_v14  ;;  %v37_v17 = vmul.f32 0.03125, %v32_v15  ;;  %v42_v18 = vmul.f32 %v38_v12, %v38_v12  ;;  %v44_v19 = vmul.f32 %v40_v13, %v40_v13 }
  0x97   :  { %v39_v20 = vsub.f32 %v15_v2, %v35_v16  ;;  %v41_v21 = vsub.f32 %v17_v5, %v37_v17  ;;  %v46_v22 = vsel %vm20_vm0, %v42_v18, 0.0  ;;  %v52_v23 = vsel %vm20_vm0, %v44_v19, 0.0 }
  0x98   :  { %47 = vadd.xlane.f32.xlu0 %v46_v22 }
  0x99   :  { %v43_v24 = vmul.f32 %v39_v20, %v39_v20  ;;  %v45_v25 = vmul.f32 %v41_v21, %v41_v21 }
  0x9b   :  { %v49_v26 = vsel %vm20_vm0, %v43_v24, 0.0  ;;  %v55_v27 = vsel %vm20_vm0, %v45_v25, 0.0 }
  0x9c   :  { %53 = vadd.xlane.f32.xlu0 %v52_v23  ;;  %50 = vadd.xlane.f32.xlu1 %v49_v26 }
  0xa0   :  { %56 = vadd.xlane.f32.xlu1 %v55_v27 }
 0x125   :  { %v48_v28 = vpop.xlane.xlu0 %47 }
 0x126   :  { %v58_v29 = vmul.f32 0.03125, %v48_v28 }
 0x128   :  { %v62_v30 = vadd.f32 1e-12, %v58_v29 }
 0x129   :  { %v51_v31 = vpop.xlane.xlu1 %50  ;;  %v54_v32 = vpop.xlane.xlu0 %53 }
 0x12a   :  { %104 = vrsqrt.f32 %v62_v30  ;;  %v59_v33 = vmul.f32 0.03125, %v51_v31  ;;  %v60_v34 = vmul.f32 0.03125, %v54_v32 }
 0x12c   :  { %v63_v35 = vadd.f32 1e-12, %v59_v33  ;;  %v64_v36 = vadd.f32 1e-12, %v60_v34 }
 0x12d   :  { %v57_v37 = vpop.xlane.xlu1 %56 }
 0x12e   :  { %106 = vrsqrt.f32 %v63_v35  ;;  %v61_v38 = vmul.f32 0.03125, %v57_v37 }
 0x12f   :  { %108 = vrsqrt.f32 %v64_v36 }
 0x130   :  { %v65_v39 = vadd.f32 1e-12, %v61_v38 }
 0x132   :  { %110 = vrsqrt.f32 %v65_v39 }
 0x134   :  { %v105_v40 = vpop.eup %104 }
 0x135   :  { %v70_v42 = vmul.f32 %v105_v40, %v38_v12 }
 0x137   :  { %v80_v44 = vmul.f32 %v102_v41, %v70_v42 }
 0x138   :  { %v107_v45 = vpop.eup %106 }
 0x139   :  { %v109_v46 = vpop.eup %108  ;;  %v90_v47 = vadd.f32 %v103_v43, %v80_v44  ;;  %v71_v48 = vmul.f32 %v107_v45, %v39_v20 }
 0x13a   :  { %v72_v49 = vmul.f32 %v109_v46, %v40_v13 }
 0x13b   :  { %94 = vst.msk [vmem:[%s177_s3] sm:$0xff] %vm20_vm0, %v90_v47  ;;  %v81_v50 = vmul.f32 %v102_v41, %v71_v48 }
 0x13c   :  { %v111_v51 = vpop.eup %110  ;;  %v82_v52 = vmul.f32 %v102_v41, %v72_v49 }
 0x13d   :  { %v91_v53 = vadd.f32 %v103_v43, %v81_v50  ;;  %v73_v54 = vmul.f32 %v111_v51, %v41_v21 }
 0x13e   :  { %v92_v55 = vadd.f32 %v103_v43, %v82_v52 }
 0x13f   :  { %95 = vst.msk [vmem:[%s177_s3 + $0x8] sm:$0xff] %vm20_vm0, %v91_v53  ;;  %v83_v56 = vmul.f32 %v102_v41, %v73_v54 }
 0x140   :  { %96 = vst.msk [vmem:[%s177_s3 + $0x10] sm:$0xff] %vm20_vm0, %v92_v55 }
 0x141   :  { %v93_v57 = vadd.f32 %v103_v43, %v83_v56 }
 0x143   :  { %97 = vst.msk [vmem:[%s177_s3 + $0x18] sm:$0xff] %vm20_vm0, %v93_v57 }

// kernel: bert_classifier_forward.7
= control target key start
LH: loop header
LB: loop body
LE: loop exit
PB: predicated region body
PF: predicated region fallthrough
CT: control target
= control target key end

     0   :  { %v599_v3 = vmov 0.0|0.0   ;;  %vm600_vm0 = vmmov 0   ;;  %v601_v6 = vmov 0.0   ;;  %s740_s0 = inlined_call_operand.vmem [shape: f32[2,32], index: 0, kind: input, shape index: {}]   ;;  %s741_s1 = inlined_call_operand.vmem [shape: f32[2,32], index: 1, kind: input, shape index: {}]   ;;  %s742_s2 = inlined_call_operand.vmem [shape: f32[32,32], index: 2, kind: input, shape index: {}]   ;;  %s743_s3 = inlined_call_operand.vmem [shape: f32[1,32], index: 3, kind: input, shape index: {}]   ;;  %s744_s4 = inlined_call_operand.vmem [shape: f32[32,2], index: 4, kind: input, shape index: {}]   ;;  %s745_s5 = inlined_call_operand.vmem [shape: f32[32,2], index: 5, kind: input, shape index: {}]   ;;  %s746_s6 = inlined_call_operand.vmem [shape: f32[32,2], index: 6, kind: input, shape index: {}]   ;;  %s747_s7 = inlined_call_operand.vmem [shape: f32[1,2], index: 7, kind: input, shape index: {}]   ;;  %s748_s8 = inlined_call_operand.hbm [shape: f32[2,2], index: 8, kind: output, shape index: {}]  }
   0x1   :  { %v30_v0 = vld [vmem:[%s742_s2] sm:$0xff]  ;;  %v31_v1 = vld [vmem:[%s742_s2 + $0x8] sm:$0xff]  ;;  %v32_v2 = vld [vmem:[%s742_s2 + $0x10] sm:$0xff]  ;;  %537 = vmatprep.subr.bf16.mxu0 %v599_v3  ;;  %543 = vmatprep.subr.bf16.mxu1 %v599_v3 }
   0x2   :  { %v538_v4 = vpack.c.bf16 %v31_v1, %v30_v0  ;;  %v33_v5 = vld [vmem:[%s742_s2 + $0x18] sm:$0xff]  ;;  %490 = vmatprep.mubr.msk.f32.mxu0 %vm600_vm0, %v601_v6  ;;  %501 = vmatprep.mubr.msk.f32.mxu1 %vm600_vm0, %v601_v6 }
   0x3   :  { %13 = vsyncpa [#allocation3], 0  ;;  %v541_v7 = vpack.c.bf16 %v33_v5, %v32_v2  ;;  %v35_v8 = vld [vmem:[%s740_s0] sm:$0x3]  ;;  %vm42_vm1 = vcmask 261120   ;;  %v199_v11 = vld [vmem:[%s745_s5 + $0x8] sm:$0xff] }
   0x4   :  { %539 = vmatpush3.bf16.msra.mxu0 %v538_v4  ;;  %545 = vmatpush3.bf16.msra.mxu1 %v538_v4  ;;  %v117_v9 = vld [vmem:[%s741_s1] sm:$0x3]  ;;  %v195_v14 = vld [vmem:[%s744_s4 + $0x8] sm:$0xff]  ;;  %v200_v16 = vld [vmem:[%s745_s5 + $0x10] sm:$0xff]  ;;  %s602_s15 = smov [#allocation2]   ;;  %vm434_vm2 = vcmask 9216  }
   0x5   :  { %540 = vmatprep.subr.bf16.mxu0 %v599_v3  ;;  %546 = vmatprep.subr.bf16.mxu1 %v599_v3  ;;  %v198_v10 = vld [vmem:[%s745_s5] sm:$0xff]  ;;  %v201_v17 = vld [vmem:[%s745_s5 + $0x18] sm:$0xff]  ;;  %v196_v19 = vld [vmem:[%s744_s4 + $0x10] sm:$0xff]  ;;  %s442_s16 = sshll.u32 %s602_s15, 4  ;;  %s443_s16 = int_to_ptr.vmem [resolvable:$true] %s442_s16 }
   0x6   :  { %v550_v12 = vpack.c.bf16 %v199_v11, %v198_v10  ;;  %v194_v13 = vld [vmem:[%s744_s4] sm:$0xff]  ;;  %v553_v18 = vpack.c.bf16 %v201_v17, %v200_v16  ;;  %v197_v20 = vld [vmem:[%s744_s4 + $0x18] sm:$0xff]  ;;  %v349_v30 = vld [vmem:[%s746_s6 + $0x8] sm:$0xff]  ;;  %s575_s17 = scalar_lea.vmem %s443_s16, 32  ;;  %p580_p1 = scmp.lt.s32.totalorder %s443_s16, %s443_s16 }
   0x7   :  { %v556_v15 = vpack.c.bf16 %v195_v14, %v194_v13  ;;  %v559_v21 = vpack.c.bf16 %v197_v20, %v196_v19  ;;  %v450_v22 = vld [vmem:[%s743_s3] ss:$0 sm:$0xff]  ;;  %v350_v33 = vld [vmem:[%s746_s6 + $0x10] sm:$0xff]  ;;  %v351_v34 = vld [vmem:[%s746_s6 + $0x18] sm:$0xff]  ;;  %p576_p0 = scmp.ne.s32.totalorder %s443_s16, %s575_s17  ;;  %p581_p2 = scmp.lt.s32.totalorder %s575_s17, %s575_s17 }
   0x8   :  { %542 = vmatpush3.bf16.msra.mxu0 %v541_v7  ;;  %548 = vmatpush3.bf16.msra.mxu1 %v541_v7  ;;  %v348_v29 = vld [vmem:[%s746_s6] sm:$0xff]  ;;  %v565_v37 = vpack.c.bf16 %v351_v34, %v350_v33 }
   0x9   :  { %549 = vmatprep.subr.bf16.mxu0 %v599_v3  ;;  %555 = vmatprep.subr.bf16.mxu1 %v599_v3  ;;  %v562_v31 = vpack.c.bf16 %v349_v30, %v348_v29  ;;  %v456_v45 = vld [vmem:[%s747_s7] ss:$0 sm:$0xff]  ;;  %p582_p3 = por %p581_p2, %p580_p1 }
   0xb   :  { %491 = vmatmul.mubr.msk.f32.vlgmr.msra.gmra.mrb[0].mxu0 %vm42_vm1, %v35_v8  ;;  %502 = vmatmul.mubr.msk.f32.vlgmr.msra.gmra.mrb[0].mxu1 %vm42_vm1, %v117_v9  ;;  %p583_p4 = pnand %p582_p3, %p576_p0 }
   0xc   :  { %512 = vmatprep.mubr.msk.f32.mxu0 %vm600_vm0, %v601_v6  ;;  %523 = vmatprep.mubr.msk.f32.mxu1 %vm600_vm0, %v601_v6 }
   0xd   :  { %551 = vmatpush3.bf16.msra.mxu0 %v550_v12  ;;  %557 = vmatpush3.bf16.msra.mxu1 %v556_v15 }
   0xe   :  { %552 = vmatprep.subr.bf16.mxu0 %v599_v3  ;;  %558 = vmatprep.subr.bf16.mxu1 %v599_v3 }
  0x11   :  { %554 = vmatpush3.bf16.msra.mxu0 %v553_v18  ;;  %560 = vmatpush3.bf16.msra.mxu1 %v559_v21 }
  0x12   :  { %561 = vmatprep.subr.bf16.mxu0 %v599_v3 }
  0xde   :  { %v112_v23 = vpop.f32.mrb[0].mxu0  ;;  %v187_v24 = vpop.f32.mrb[0].mxu1 }
  0xdf   :  { %v113_v25 = vadd.f32 %v450_v22, %v112_v23  ;;  %v188_v26 = vadd.f32 %v450_v22, %v187_v24  ;;  %v503_v27 = vpop.f32.mrb[1].mxu1  ;;  %v492_v28 = vpop.f32.mrb[1].mxu0 }
  0xe1   :  { %571 = vtanh.f32 %v113_v25 }
  0xe2   :  { %573 = vtanh.f32 %v188_v26 }
  0xeb   :  { %v572_v32 = vpop.eup %571 }
  0xec   :  { %v574_v35 = vpop.eup %573  ;;  %524 = vmatmul.mubr.msk.f32.vlgmr.msra.gmra.mrb[2].mxu1 %vm42_vm1, %v572_v32 }
  0xed   :  { %v192_v36 = vsub.f32 %v572_v32, %v574_v35  ;;  %513 = vmatmul.mubr.msk.f32.vlgmr.msra.gmra.mrb[2].mxu0 %vm42_vm1, %v574_v35 }
  0xee   :  { %563 = vmatpush3.bf16.msra.mxu0 %v562_v31  ;;  %534 = vmatprep.mubr.msk.f32.mxu0 %vm600_vm0, %v601_v6 }
  0xef   :  { %564 = vmatprep.subr.bf16.mxu0 %v599_v3  ;;  %v193_v38 = vand.u32 2147483647, %v192_v36 }
  0xf2   :  { %566 = vmatpush3.bf16.msra.mxu0 %v565_v37 }
  0xf5   :  { %535 = vmatmul.mubr.msk.f32.vlgmr.msra.gmra.mrb[4].mxu0 %vm42_vm1, %v193_v38 }
 0x1bf   :  { %v344_v39 = vpop.f32.mrb[2].mxu1 }
 0x1c0   :  { %v271_v40 = vpop.f32.mrb[2].mxu0  ;;  %v525_v41 = vpop.f32.mrb[3].mxu1 }
 0x1c1   :  { %v345_v42 = vadd.f32 %v344_v39, %v271_v40  ;;  %v514_v43 = vpop.f32.mrb[3].mxu0 }
 0x1c8   :  { %v421_v44 = vpop.f32.mrb[4].mxu0 }
 0x1c9   :  { %v425_v46 = vadd.f32 %v421_v44, %v345_v42  ;;  %v536_v47 = vpop.f32.mrb[5].mxu0 }
 0x1cb   :  { %v433_v48 = vadd.f32 %v456_v45, %v425_v46 }
 0x1cd   :  { %435 = vst.msk [vmem:[#allocation2] sm:$0x3] %vm434_vm2, %v433_v48 }
 0x1ce   :  { %586 = shalt.err (!%p583_p4)
}
 0x1cf   :  { %s587_s1 = scalar_lea.hbm %s748_s8, 32 }
 0x1d0   :  { %p588_p5 = scmp.ne.s32.totalorder %s748_s8, %s587_s1  ;;  %p591_p6 = scmp.lt.u32.totalorder %s587_s1, %s748_s8 }
 0x1d2   :  { %p593_p7 = pnand %p591_p6, %p588_p5 }
 0x1d4   :  { %596 = shalt.err (!%p593_p7)
}
 0x1d5   :  { %445 = dma.vmem_to_hbm [thread:$0]  %s443_s16, 32, %s748_s8, [#allocation3]  }
 0x1d6   :  { %597 = dma.done.wait [#allocation3], 32  }
 0x1d7   :  { %598 = vsyncadd [#allocation3], 4294967264 }
 0x1d8   :  { %449 = vsyncpa [#allocation3], 1 }

// kernel: bert_classifier_forward.5
= control target key start
LH: loop header
LB: loop body
LE: loop exit
PB: predicated region body
PF: predicated region fallthrough
CT: control target
= control target key end

     0   :  { %s2169_s29 = smov 0   ;;  %s2378_s0 = inlined_call_operand.vmem [shape: f32[32,32], index: 0, kind: input, shape index: {}]   ;;  %s2379_s1 = inlined_call_operand.vmem [shape: f32[4,1,8], index: 1, kind: input, shape index: {}]   ;;  %s2380_s2 = inlined_call_operand.vmem [shape: f32[32,96], index: 2, kind: input, shape index: {}]   ;;  %s2381_s3 = inlined_call_operand.vmem [shape: f32[1,96], index: 3, kind: input, shape index: {}]   ;;  %s2382_s4 = inlined_call_operand.vmem [shape: f32[32,32], index: 4, kind: input, shape index: {}]   ;;  %s2383_s5 = inlined_call_operand.vmem [shape: f32[1,32], index: 5, kind: input, shape index: {}]   ;;  %s2384_s6 = inlined_call_operand.vmem [shape: f32[1,32], index: 6, kind: input, shape index: {}]   ;;  %s2385_s7 = inlined_call_operand.vmem [shape: f32[1,32], index: 7, kind: input, shape index: {}]   ;;  %s2386_s8 = inlined_call_operand.vmem [shape: f32[32,64], index: 8, kind: input, shape index: {}]   ;;  %s2387_s9 = inlined_call_operand.vmem [shape: f32[1,64], index: 9, kind: input, shape index: {}]   ;;  %s2388_s10 = inlined_call_operand.vmem [shape: f32[64,32], index: 10, kind: input, shape index: {}]   ;;  %s2389_s11 = inlined_call_operand.vmem [shape: f32[1,32], index: 11, kind: input, shape index: {}]   ;;  %s2390_s12 = inlined_call_operand.vmem [shape: f32[1,32], index: 12, kind: input, shape index: {}]   ;;  %s2391_s13 = inlined_call_operand.vmem [shape: f32[1,32], index: 13, kind: input, shape index: {}]   ;;  %s2392_s14 = inlined_call_operand.vmem [shape: f32[32,32], index: 14, kind: output, shape index: {}]  }
   0x1 LB: > { %s1809_s30 = sadd.s32 4294967295, %s2085_s29   ;;  %p1813_p0 = scmp.ge.s32.totalorder %s2085_s29, 1  ;;  %s2085_s29 = sphi %s2169_s29, %s24_s29  }
   0x2   : > { %p423_p1 = scmp.lt.s32.totalorder %s2085_s29, 3 }
   0x4   : > { %p424_p2 = pnand %p1813_p0, %p423_p1 }
   0x5   : > { %v494_v0 = vld [vmem:[%s2380_s2] sm:$0xff] (!%p424_p2)  ;;  %v495_v1 = vld [vmem:[%s2380_s2 + $0x8] sm:$0xff] (!%p424_p2)  ;;  %v496_v2 = vld [vmem:[%s2380_s2 + $0x10] sm:$0xff] (!%p424_p2)  ;;  %s1814_s21 = sshll.u32 (!%p424_p2), %s1809_s30, 1  ;;  %vm505_vm0 = vcmask (!%p424_p2), 261120   ;;  %v2087_v8 = vmov (!%p424_p2), 0.0  }
   0x6   : > { %427 = sbr.rel (%p424_p2) target bundleno = 2944 (0xb80), region = 76  ;;  %v1994_v3 = vpack.c.bf16 (!%p424_p2), %v495_v1, %v494_v0  ;;  %v497_v4 = vld [vmem:[%s2380_s2 + $0x18] sm:$0xff] (!%p424_p2)  ;;  %p474_p3 = scmp.lt.s32.totalorder (!%p424_p2), %s1814_s21, 3  ;;  %1920 = vmatprep.subr.mxu0 (!%p424_p2), %v2087_v8  ;;  %vm2088_vm1 = vmmov (!%p424_p2), 0   ;;  %v1819_v9 = vld [vmem:[%s2381_s3] ss:$0 sm:$0xff] (!%p424_p2) }
   0x7   : > { %v1998_v5 = vpack.c.bf16 (!%p424_p2), %v497_v4, %v496_v2  ;;  %1922 = vmatprep.mubr.msk.f32.mxu0 (!%p424_p2), %vm2088_vm1, %v2087_v8  ;;  %s2089_s15 = smov (!%p424_p2), 96   ;;  %vm594_vm2 = vcmask (!%p424_p2), 130048   ;;  %vm762_vm3 = vcmask (!%p424_p2), 64512   ;;  %s2090_s19 = smov (!%p424_p2), 64   ;;  %vm1614_vm4 = vcmask (!%p424_p2), 523264  }
   0x8   : > { %1995 = vmatprep.subr.bf16.mxu1 (!%p424_p2), %v1994_v3  ;;  %s2091_s20 = smov (!%p424_p2), 80   ;;  %s2092_s22 = smov (!%p424_p2), 112  }
   0x9   : > { %1997 = vmatpush3.bf16.msra.mxu1 (!%p424_p2), %v1994_v3  ;;  %s2093_s23 = smov (!%p424_p2), 48  }
   0xa   : > { %1999 = vmatprep.subr.bf16.mxu1 (!%p424_p2), %v1998_v5 }
   0xd   : > { %s2394_s21 = smov (!%p474_p3, %s1814_s21), 3  ;;  %2001 = vmatpush3.bf16.msra.mxu1 %v1998_v5 }
   0xe   : > { %s1815_s24 = sshll.u32 %s2394_s21, 3  ;;  %1910 = vmatprep.subr.mxu1 %v2087_v8  ;;  %s482_s18 = scalar_lea.vmem %s2379_s1, %s2394_s21 }
   0xf   : > { %s477_s27 = scalar_lea.vmem %s2378_s0, %s1815_s24  ;;  %v2236_v17 = vld [vmem:[%s482_s18] ss:$0 sm:$0xff]  ;;  %v2239_v22 = vld [vmem:[%s482_s18 + $0x1] ss:$0 sm:$0xff] }
  0x10   : > { %v2197_v6 = vld [vmem:[%s477_s27] sm:$0xff]  ;;  %v2199_v7 = vld [vmem:[%s477_s27 + $0x8] sm:$0xff] }
  0x11   : > { %1907 = vmatprep.mubr.msk.f32.mxu1 %vm505_vm0, %v2197_v6 }
  0x12   : > { %1908 = vmatmul.mubr.msk.f32.vlgmr.msra.gmra.mrb[0].mxu1 %vm505_vm0, %v2199_v7 }
  0x13   : > { %1912 = vmatprep.mubr.msk.f32.mxu1 %vm2088_vm1, %v2087_v8 }
  0xe5   : > { %v1909_v10 = vpop.f32.mrb[0].mxu1 }
  0xe6   : > { %v578_v11 = vpop.f32.mrb[1].mxu1  ;;  %v2217_v13 = vadd.f32 %v1909_v10, %v1819_v9 }
  0xe7   : > { %v2214_v12 = vadd.f32 %v1819_v9, %v578_v11 }
  0xe9   : > { %592 = vrot.lane.b32.xlu0 %v2214_v12, %s2089_s15 }
  0xed   : > { %670 = vrot.lane.b32.xlu0 %v2217_v13, %s2089_s15 }
 0x15b   : > { %v593_v14 = vpop.permute.xlu0 %592 }
 0x15c   : > { %1911 = vmatpush3.xpose.msk.msra.mxu1 %vm594_vm2, %v593_v14 }
 0x15d   : > { %1915 = vmatprep.subr.mxu1 %v2087_v8 }
 0x15f   : > { %1913 = vmatmul.mubr.msk.f32.vlgmr.msra.gmra.mrb[2].mxu1 %vm594_vm2, %v2214_v12  ;;  %v671_v15 = vpop.permute.xlu0 %670 }
 0x160   : > { %1916 = vmatpush3.xpose.msk.msra.mxu1 %vm594_vm2, %v671_v15  ;;  %1917 = vmatprep.mubr.msk.f32.mxu1 %vm2088_vm1, %v2087_v8 }
 0x161   : > { %1925 = vmatprep.subr.mxu1 %v2087_v8 }
 0x163   : > { %1918 = vmatmul.mubr.msk.f32.vlgmr.msra.gmra.mrb[4].mxu1 %vm594_vm2, %v2217_v13 }
 0x164   : > { %1927 = vmatprep.mubr.msk.f32.mxu1 %vm2088_vm1, %v2087_v8 }
 0x232   : > { %v665_v16 = vpop.f32.mrb[2].mxu1 }
 0x233   : > { %v746_v18 = vmul.f32 0.25, %v665_v16  ;;  %v1914_v19 = vpop.f32.mrb[3].mxu1 }
 0x235   : > { %v760_v20 = vadd.f32 %v2236_v17, %v746_v18 }
 0x236   : > { %v742_v21 = vpop.f32.mrb[4].mxu1 }
 0x237   : > { %v747_v23 = vmul.f32 0.25, %v742_v21  ;;  %v1919_v24 = vpop.f32.mrb[5].mxu1  ;;  %v763_v25 = vsel %vm762_vm3, %v760_v20, -inf  ;;  %v589_v21 = vld [vmem:[%s2382_s4 + $0x10] sm:$0xff] }
 0x238   : > { %764 = vmax.xlane.f32.xlu1 %v763_v25  ;;  %v588_v24 = vld [vmem:[%s2382_s4 + $0x8] sm:$0xff] }
 0x239   : > { %v761_v26 = vadd.f32 %v2239_v22, %v747_v23  ;;  %v587_v23 = vld [vmem:[%s2382_s4] sm:$0xff] }
 0x23a   : > { %v2006_v25 = vpack.c.bf16 %v588_v24, %v587_v23 }
 0x23b   : > { %v766_v27 = vsel %vm762_vm3, %v761_v26, -inf }
 0x23c   : > { %767 = vmax.xlane.f32.xlu1 %v766_v27 }
 0x24d   : > { %785 = vrot.lane.b32.xlu1 %v2214_v12, %s2090_s19 }
 0x251   : > { %861 = vrot.lane.b32.xlu1 %v2217_v13, %s2090_s19  ;;  %s488_s19 = scalar_lea.vmem %s2392_s14, %s1815_s24 }
 0x255   : > { %939 = vrot.lane.b32.xlu1 %v2214_v12, %s2091_s20 }
 0x259   : > { %1017 = vrot.lane.b32.xlu1 %v2217_v13, %s2091_s20 }
 0x2c5   : > { %v765_v28 = vpop.xlane.xlu1 %764 }
 0x2c6   : > { %v769_v29 = vsub.f32 %v760_v20, %v765_v28 }
 0x2c8   : > { %v771_v30 = vmul.f32 1.442695, %v769_v29 }
 0x2c9   : > { %v768_v31 = vpop.xlane.xlu1 %767 }
 0x2ca   : > { %2051 = vpow2.f32 %v771_v30  ;;  %v770_v32 = vsub.f32 %v761_v26, %v768_v31  ;;  %v1840_v30 = vld [vmem:[%s2383_s5] ss:$0 sm:$0xff] }
 0x2cc   : > { %v773_v33 = vmul.f32 1.442695, %v770_v32 }
 0x2cd   : > { %v786_v34 = vpop.permute.xlu1 %785 }
 0x2ce   : > { %2053 = vpow2.f32 %v773_v33  ;;  %1921 = vmatpush3.msra.mxu0 %v786_v34 }
 0x2cf   : > { %1930 = vmatprep.subr.mxu0 %v2087_v8 }
 0x2d1   : > { %v862_v35 = vpop.permute.xlu1 %861 }
 0x2d2   : > { %1926 = vmatpush3.msra.mxu1 %v862_v35 }
 0x2d3   : > { %1935 = vmatprep.subr.mxu1 %v2087_v8 }
 0x2d4   : > { %v2052_v36 = vpop.eup %2051 }
 0x2d5   : > { %v775_v37 = vsel %vm762_vm3, %v2052_v36, 0.0  ;;  %v940_v40 = vpop.permute.xlu1 %939 }
 0x2d6   : > { %776 = vadd.xlane.f32.xlu0 %v775_v37 }
 0x2d8   : > { %v2054_v38 = vpop.eup %2053 }
 0x2d9   : > { %v778_v39 = vsel %vm762_vm3, %v2054_v38, 0.0  ;;  %v1018_v41 = vpop.permute.xlu1 %1017 }
 0x2da   : > { %779 = vadd.xlane.f32.xlu1 %v778_v39 }
 0x2eb   : > { %1015 = vrot.lane.b32.xlu1 %v2217_v13, %s2092_s22 }
 0x2ec   : > { %937 = vrot.lane.b32.xlu0 %v2214_v12, %s2092_s22 }
 0x363   : > { %v777_v42 = vpop.xlane.xlu0 %776 }
 0x364   : > { %2055 = vrcp.f32 %v777_v42 }
 0x367   : > { %v780_v43 = vpop.xlane.xlu1 %779  ;;  %v938_v48 = vpop.permute.xlu0 %937 }
 0x368   : > { %2057 = vrcp.f32 %v780_v43 }
 0x36b   : > { %v1016_v49 = vpop.permute.xlu1 %1015 }
 0x36e   : > { %v2056_v44 = vpop.eup %2055 }
 0x36f   : > { %v782_v45 = vmul.f32 %v2056_v44, %v2052_v36 }
 0x371   : > { %1923 = vmatmul.mubr.msk.f32.vlgmr.msra.gmra.mrb[0].mxu0 %vm762_vm3, %v782_v45 }
 0x372   : > { %v2058_v46 = vpop.eup %2057  ;;  %1931 = vmatpush3.xpose.msk.msra.mxu0 %vm594_vm2, %v940_v40  ;;  %1932 = vmatprep.mubr.msk.f32.mxu0 %vm2088_vm1, %v2087_v8 }
 0x373   : > { %v784_v47 = vmul.f32 %v2058_v46, %v2054_v38  ;;  %1940 = vmatprep.subr.mxu0 %v2087_v8 }
 0x375   : > { %1928 = vmatmul.mubr.msk.f32.vlgmr.msra.gmra.mrb[6].mxu1 %vm762_vm3, %v784_v47  ;;  %1933 = vmatmul.mubr.msk.f32.vlgmr.msra.gmra.mrb[2].mxu0 %vm594_vm2, %v938_v48  ;;  %v1490_v48 = vld [vmem:[%s2386_s8 + $0x8] sm:$0xff] }
 0x376   : > { %1936 = vmatpush3.xpose.msk.msra.mxu1 %vm594_vm2, %v1018_v41  ;;  %1937 = vmatprep.mubr.msk.f32.mxu1 %vm2088_vm1, %v2087_v8 }
 0x377   : > { %1945 = vmatprep.subr.mxu1 %v2087_v8  ;;  %1942 = vmatprep.mubr.msk.f32.mxu0 %vm2088_vm1, %v2087_v8 }
 0x379   : > { %1938 = vmatmul.mubr.msk.f32.vlgmr.msra.gmra.mrb[8].mxu1 %vm594_vm2, %v1016_v49 }
 0x37a   : > { %1947 = vmatprep.mubr.msk.f32.mxu1 %vm2088_vm1, %v2087_v8 }
 0x444   : > { %v2270_v50 = vpop.f32.mrb[0].mxu0 }
 0x445   : > { %v1924_v51 = vpop.f32.mrb[1].mxu0 }
 0x446   : > { %v1492_v51 = vld [vmem:[%s2386_s8 + $0x18] sm:$0xff] }
 0x448   : > { %v933_v52 = vpop.f32.mrb[6].mxu1  ;;  %v1011_v53 = vpop.f32.mrb[2].mxu0 }
 0x449   : > { %v1093_v54 = vmul.f32 0.25, %v1011_v53  ;;  %v1929_v55 = vpop.f32.mrb[7].mxu1  ;;  %v1934_v56 = vpop.f32.mrb[3].mxu0 }
 0x44b   : > { %v1095_v57 = vadd.f32 %v2236_v17, %v1093_v54 }
 0x44c   : > { %v1089_v58 = vpop.f32.mrb[8].mxu1 }
 0x44d   : > { %v1094_v59 = vmul.f32 0.25, %v1089_v58  ;;  %v1939_v60 = vpop.f32.mrb[9].mxu1  ;;  %v1097_v61 = vsel %vm762_vm3, %v1095_v57, -inf }
 0x44e   : > { %1098 = vmax.xlane.f32.xlu1 %v1097_v61  ;;  %v1841_v60 = vld [vmem:[%s2384_s6] ss:$0 sm:$0xff] }
 0x44f   : > { %v1096_v62 = vadd.f32 %v2239_v22, %v1094_v59 }
 0x451   : > { %v1100_v63 = vsel %vm762_vm3, %v1096_v62, -inf }
 0x452   : > { %1101 = vmax.xlane.f32.xlu0 %v1100_v63 }
 0x468   : > { %1195 = vrot.lane.b32.xlu0 %v2217_v13, %s2093_s23 }
 0x4db   : > { %v1099_v0 = vpop.xlane.xlu1 %1098 }
 0x4dc   : > { %v1103_v1 = vsub.f32 %v1095_v57, %v1099_v0  ;;  %v1842_v0 = vld [vmem:[%s2385_s7] ss:$0 sm:$0xff] }
 0x4de   : > { %v1105_v2 = vmul.f32 1.442695, %v1103_v1 }
 0x4df   : > { %v1102_v3 = vpop.xlane.xlu0 %1101 }
 0x4e0   : > { %2059 = vpow2.f32 %v1105_v2  ;;  %v1104_v4 = vsub.f32 %v1096_v62, %v1102_v3 }
 0x4e2   : > { %v1107_v5 = vmul.f32 1.442695, %v1104_v4 }
 0x4e3   : > { %v1196_v8 = vpop.permute.xlu0 %1195 }
 0x4e4   : > { %2061 = vpow2.f32 %v1107_v5  ;;  %1946 = vmatpush3.msra.mxu1 %v1196_v8  ;;  %v1599_v5 = vld [vmem:[%s2388_s10] sm:$0xff]  ;;  %v1600_v8 = vld [vmem:[%s2388_s10 + $0x8] sm:$0xff] }
 0x4ea   : > { %v2060_v9 = vpop.eup %2059 }
 0x4eb   : > { %v1109_v10 = vsel %vm762_vm3, %v2060_v9, 0.0 }
 0x4ec   : > { %1110 = vadd.xlane.f32.xlu1 %v1109_v10  ;;  %v1601_v10 = vld [vmem:[%s2388_s10 + $0x10] sm:$0xff] }
 0x4ee   : > { %v2062_v11 = vpop.eup %2061 }
 0x4ef   : > { %v1112_v14 = vsel %vm762_vm3, %v2062_v11, 0.0 }
 0x4f0   : > { %1113 = vadd.xlane.f32.xlu1 %v1112_v14 }
 0x501   : > { %1119 = vrot.lane.b32.xlu1 %v2214_v12, %s2093_s23  ;;  %v590_v12 = vld [vmem:[%s2382_s4 + $0x18] sm:$0xff] }
 0x502   : > { %v2002_v22 = vpack.c.bf16 %v590_v12, %v589_v21 }
 0x579   : > { %v1111_v13 = vpop.xlane.xlu1 %1110 }
 0x57a   : > { %2063 = vrcp.f32 %v1111_v13  ;;  %v1603_v13 = vld [vmem:[%s2388_s10 + $0x20] sm:$0xff] }
 0x57d   : > { %v1114_v15 = vpop.xlane.xlu1 %1113 }
 0x57e   : > { %2065 = vrcp.f32 %v1114_v15  ;;  %v1604_v15 = vld [vmem:[%s2388_s10 + $0x28] sm:$0xff] }
 0x581   : > { %v1120_v16 = vpop.permute.xlu1 %1119 }
 0x582   : > { %1941 = vmatpush3.msra.mxu0 %v1120_v16  ;;  %v2026_v16 = vpack.c.bf16 %v1604_v15, %v1603_v13 }
 0x583   : > { %2003 = vmatprep.subr.bf16.mxu0 %v2002_v22 }
 0x584   : > { %v2064_v17 = vpop.eup %2063 }
 0x585   : > { %v1116_v18 = vmul.f32 %v2064_v17, %v2060_v9  ;;  %v2018_v9 = vpack.c.bf16 %v1600_v8, %v1599_v5  ;;  %v1605_v17 = vld [vmem:[%s2388_s10 + $0x30] sm:$0xff]  ;;  %v1850_v8 = vld [vmem:[%s2391_s13] ss:$0 sm:$0xff] }
 0x587   : > { %1943 = vmatmul.mubr.msk.f32.vlgmr.msra.gmra.mrb[4].mxu0 %vm762_vm3, %v1116_v18  ;;  %v1606_v18 = vld [vmem:[%s2388_s10 + $0x38] sm:$0xff] }
 0x588   : > { %v2066_v19 = vpop.eup %2065  ;;  %2005 = vmatpush3.bf16.msra.mxu0 %v2002_v22 }
 0x589   : > { %v1118_v20 = vmul.f32 %v2066_v19, %v2062_v11  ;;  %2007 = vmatprep.subr.bf16.mxu0 %v2006_v25  ;;  %v1602_v11 = vld [vmem:[%s2388_s10 + $0x18] sm:$0xff]  ;;  %v2030_v19 = vpack.c.bf16 %v1606_v18, %v1605_v17 }
 0x58a   : > { %v2022_v14 = vpack.c.bf16 %v1602_v11, %v1601_v10 }
 0x58b   : > { %1948 = vmatmul.mubr.msk.f32.vlgmr.msra.gmra.mrb[10].mxu1 %vm762_vm3, %v1118_v20  ;;  %v1843_v20 = vld [vmem:[%s2387_s9] ss:$0 sm:$0xff] }
 0x65a   : > { %v1191_v26 = vpop.f32.mrb[4].mxu0 }
 0x65b   : > { %v1944_v27 = vpop.f32.mrb[5].mxu0  ;;  %1954 = vmatprep.mubr.msk.f32.mxu0 %vm594_vm2, %v1191_v26 }
 0x65e   : > { %v1267_v28 = vpop.f32.mrb[10].mxu1 }
 0x65f   : > { %v1949_v29 = vpop.f32.mrb[11].mxu1  ;;  %1955 = vmatmul.mubr.msk.f32.vlgmr.msra.gmra.mrb[6].mxu0 %vm594_vm2, %v1267_v28 }
 0x660   : > { %2009 = vmatpush3.bf16.msra.mxu0 %v2006_v25  ;;  %1961 = vmatprep.mubr.msk.f32.mxu0 %vm594_vm2, %v2270_v50  ;;  %v1491_v50 = vld [vmem:[%s2386_s8 + $0x10] sm:$0xff] }
 0x661   : > { %2019 = vmatprep.subr.bf16.mxu0 %v2018_v9 }
 0x667   : > { %1962 = vmatmul.mubr.msk.f32.vlgmr.msra.gmra.mrb[6].mxu0 %vm594_vm2, %v933_v52  ;;  %v2014_v52 = vpack.c.bf16 %v1492_v51, %v1491_v50 }
 0x668   : > { %2021 = vmatpush3.bf16.msra.mxu0 %v2018_v9 }
 0x669   : > { %2023 = vmatprep.subr.bf16.mxu0 %v2022_v14 }
 0x66c   : > { %2025 = vmatpush3.bf16.msra.mxu0 %v2022_v14 }
 0x66d   : > { %2027 = vmatprep.subr.bf16.mxu0 %v2026_v16 }
 0x670   : > { %2029 = vmatpush3.bf16.msra.mxu0 %v2026_v16 }
 0x671   : > { %2031 = vmatprep.subr.bf16.mxu0 %v2030_v19 }
 0x674   : > { %2033 = vmatpush3.bf16.msra.mxu0 %v2030_v19 }
 0x73a   : > { %v1963_v31 = vpop.f32.mrb[6].mxu0 }
 0x73b   : > { %v1441_v32 = vadd.f32 %v1963_v31, %v1840_v30  ;;  %v1424_v33 = vpop.f32.mrb[7].mxu0 }
 0x73c   : > { %v1440_v34 = vadd.f32 %v1840_v30, %v1424_v33 }
 0x73d   : > { %v1443_v35 = vadd.f32 %v1441_v32, %v2199_v7 }
 0x73e   : > { %v1442_v36 = vadd.f32 %v1440_v34, %v2197_v6  ;;  %v1489_v6 = vld [vmem:[%s2386_s8] sm:$0xff] }
 0x73f   : > { %v1449_v37 = vsel %vm505_vm0, %v1443_v35, 0.0  ;;  %v2010_v49 = vpack.c.bf16 %v1490_v48, %v1489_v6 }
 0x740   : > { %1450 = vadd.xlane.f32.xlu0 %v1449_v37  ;;  %v1446_v38 = vsel %vm505_vm0, %v1442_v36, 0.0 }
 0x741   : > { %1447 = vadd.xlane.f32.xlu1 %v1446_v38  ;;  %2011 = vmatprep.subr.bf16.mxu1 %v2010_v49 }
 0x742   : > { %2013 = vmatpush3.bf16.msra.mxu1 %v2010_v49 }
 0x743   : > { %2015 = vmatprep.subr.bf16.mxu1 %v2014_v52 }
 0x746   : > { %2017 = vmatpush3.bf16.msra.mxu1 %v2014_v52 }
 0x7cd   : > { %v1451_v39 = vpop.xlane.xlu0 %1450 }
 0x7ce   : > { %v1454_v40 = vmul.f32 0.03125, %v1451_v39  ;;  %v1448_v41 = vpop.xlane.xlu1 %1447 }
 0x7cf   : > { %v1453_v42 = vmul.f32 0.03125, %v1448_v41 }
 0x7d0   : > { %v1456_v43 = vsub.f32 %v1443_v35, %v1454_v40 }
 0x7d1   : > { %v1455_v44 = vsub.f32 %v1442_v36, %v1453_v42  ;;  %v1846_v42 = vld [vmem:[%s2389_s11] ss:$0 sm:$0xff] }
 0x7d2   : > { %v1458_v45 = vmul.f32 %v1456_v43, %v1456_v43 }
 0x7d3   : > { %v1457_v46 = vmul.f32 %v1455_v44, %v1455_v44 }
 0x7d4   : > { %v1462_v47 = vsel %vm505_vm0, %v1458_v45, 0.0 }
 0x7d5   : > { %1463 = vadd.xlane.f32.xlu0 %v1462_v47  ;;  %v1459_v7 = vsel %vm505_vm0, %v1457_v46, 0.0 }
 0x7d6   : > { %1460 = vadd.xlane.f32.xlu1 %v1459_v7 }
 0x862   : > { %v1464_v53 = vpop.xlane.xlu0 %1463 }
 0x863   : > { %v1466_v54 = vmul.f32 0.03125, %v1464_v53  ;;  %v1461_v55 = vpop.xlane.xlu1 %1460 }
 0x864   : > { %v1465_v56 = vmul.f32 0.03125, %v1461_v55 }
 0x865   : > { %v1468_v57 = vadd.f32 1e-12, %v1466_v54 }
 0x866   : > { %v1467_v58 = vadd.f32 1e-12, %v1465_v56 }
 0x867   : > { %2067 = vrsqrt.f32 %v1468_v57 }
 0x868   : > { %2069 = vrsqrt.f32 %v1467_v58 }
 0x871   : > { %v2068_v59 = vpop.eup %2067 }
 0x872   : > { %v2070_v61 = vpop.eup %2069  ;;  %v1472_v62 = vmul.f32 %v2068_v59, %v1456_v43 }
 0x873   : > { %v1471_v63 = vmul.f32 %v2070_v61, %v1455_v44 }
 0x874   : > { %v1480_v1 = vmul.f32 %v1841_v60, %v1472_v62 }
 0x875   : > { %v1479_v2 = vmul.f32 %v1841_v60, %v1471_v63 }
 0x876   : > { %v1488_v4 = vadd.f32 %v1842_v0, %v1480_v1 }
 0x877   : > { %v1487_v3 = vadd.f32 %v1842_v0, %v1479_v2  ;;  %v1849_v2 = vld [vmem:[%s2390_s12] ss:$0 sm:$0xff] }
 0x879   : > { %1972 = vmatprep.mubr.msk.f32.mxu1 %vm505_vm0, %v1487_v3 }
 0x87a   : > { %1973 = vmatmul.mubr.msk.f32.vlgmr.msra.gmra.mrb[12].mxu1 %vm505_vm0, %v1488_v4 }
 0x94d   : > { %v1974_v21 = vpop.f32.mrb[12].mxu1 }
 0x94e   : > { %v1578_v12 = vadd.f32 %v1974_v21, %v1843_v20  ;;  %v1572_v22 = vpop.f32.mrb[13].mxu1 }
 0x94f   : > { %v1573_v23 = vadd.f32 %v1843_v20, %v1572_v22 }
 0x950   : > { %v1582_v24 = vmul.f32 %v1578_v12, %v1578_v12 }
 0x951   : > { %v1581_v25 = vmul.f32 %v1573_v23, %v1573_v23 }
 0x952   : > { %v1584_v26 = vmul.f32 %v1582_v24, %v1578_v12 }
 0x953   : > { %v1583_v27 = vmul.f32 %v1581_v25, %v1573_v23 }
 0x954   : > { %v1586_v28 = vmul.f32 0.044715, %v1584_v26 }
 0x955   : > { %v1585_v29 = vmul.f32 0.044715, %v1583_v27 }
 0x956   : > { %v1588_v30 = vadd.f32 %v1586_v28, %v1578_v12 }
 0x957   : > { %v1587_v31 = vadd.f32 %v1585_v29, %v1573_v23 }
 0x958   : > { %v1590_v32 = vmul.f32 0.7978846, %v1588_v30 }
 0x959   : > { %v1589_v33 = vmul.f32 0.7978846, %v1587_v31 }
 0x95a   : > { %2071 = vtanh.f32 %v1590_v32 }
 0x95b   : > { %2073 = vtanh.f32 %v1589_v33 }
 0x964   : > { %v2072_v34 = vpop.eup %2071 }
 0x965   : > { %v2074_v35 = vpop.eup %2073  ;;  %v1594_v36 = vadd.f32 1.0, %v2072_v34 }
 0x966   : > { %v1593_v37 = vadd.f32 1.0, %v2074_v35 }
 0x967   : > { %v1596_v38 = vmul.f32 0.5, %v1594_v36 }
 0x968   : > { %v1595_v39 = vmul.f32 0.5, %v1593_v37 }
 0x969   : > { %v1598_v41 = vmul.f32 %v1596_v38, %v1578_v12 }
 0x96a   : > { %v1597_v40 = vmul.f32 %v1595_v39, %v1573_v23 }
 0x96c   : > { %1991 = vmatprep.mubr.msk.f32.mxu0 %vm1614_vm4, %v1597_v40 }
 0x96d   : > { %1992 = vmatmul.mubr.msk.f32.vlgmr.msra.gmra.mrb[8].mxu0 %vm1614_vm4, %v1598_v41 }
 0xa40   : > { %v1993_v43 = vpop.f32.mrb[8].mxu0 }
 0xa41   : > { %v1693_v44 = vadd.f32 %v1993_v43, %v1846_v42  ;;  %v1687_v45 = vpop.f32.mrb[9].mxu0 }
 0xa42   : > { %v1688_v46 = vadd.f32 %v1846_v42, %v1687_v45 }
 0xa43   : > { %v1697_v47 = vadd.f32 %v1693_v44, %v1488_v4 }
 0xa44   : > { %v1696_v7 = vadd.f32 %v1688_v46, %v1487_v3 }
 0xa45   : > { %v1703_v6 = vsel %vm505_vm0, %v1697_v47, 0.0 }
 0xa46   : > { %1704 = vadd.xlane.f32.xlu0 %v1703_v6  ;;  %v1700_v48 = vsel %vm505_vm0, %v1696_v7, 0.0 }
 0xa47   : > { %1701 = vadd.xlane.f32.xlu1 %v1700_v48 }
 0xad3   : > { %v1705_v49 = vpop.xlane.xlu0 %1704 }
 0xad4   : > { %v1707_v50 = vmul.f32 0.03125, %v1705_v49  ;;  %v1702_v51 = vpop.xlane.xlu1 %1701 }
 0xad5   : > { %v1706_v52 = vmul.f32 0.03125, %v1702_v51 }
 0xad6   : > { %v1709_v53 = vsub.f32 %v1697_v47, %v1707_v50 }
 0xad7   : > { %v1708_v54 = vsub.f32 %v1696_v7, %v1706_v52 }
 0xad8   : > { %v1711_v55 = vmul.f32 %v1709_v53, %v1709_v53 }
 0xad9   : > { %v1710_v56 = vmul.f32 %v1708_v54, %v1708_v54 }
 0xada   : > { %v1715_v57 = vsel %vm505_vm0, %v1711_v55, 0.0 }
 0xadb   : > { %1716 = vadd.xlane.f32.xlu0 %v1715_v57  ;;  %v1712_v58 = vsel %vm505_vm0, %v1710_v56, 0.0 }
 0xadc   : > { %1713 = vadd.xlane.f32.xlu1 %v1712_v58 }
 0xb68   : > { %v1717_v59 = vpop.xlane.xlu0 %1716 }
 0xb69   : > { %v1719_v60 = vmul.f32 0.03125, %v1717_v59  ;;  %v1714_v61 = vpop.xlane.xlu1 %1713 }
 0xb6a   : > { %v1718_v62 = vmul.f32 0.03125, %v1714_v61 }
 0xb6b   : > { %v1721_v63 = vadd.f32 1e-12, %v1719_v60 }
 0xb6c   : > { %v1720_v0 = vadd.f32 1e-12, %v1718_v62 }
 0xb6d   : > { %2075 = vrsqrt.f32 %v1721_v63 }
 0xb6e   : > { %2077 = vrsqrt.f32 %v1720_v0 }
 0xb77   : > { %v2076_v1 = vpop.eup %2075 }
 0xb78   : > { %v2078_v3 = vpop.eup %2077  ;;  %v1725_v4 = vmul.f32 %v2076_v1, %v1709_v53 }
 0xb79   : > { %v1724_v5 = vmul.f32 %v2078_v3, %v1708_v54 }
 0xb7a   : > { %v1733_v9 = vmul.f32 %v1849_v2, %v1725_v4 }
 0xb7b   : > { %v1732_v10 = vmul.f32 %v1849_v2, %v1724_v5 }
 0xb7c   : > { %v1741_v14 = vadd.f32 %v1850_v8, %v1733_v9 }
 0xb7d   : > { %v1740_v11 = vadd.f32 %v1850_v8, %v1732_v10 }
 0xb7e   : > { %1743 = vst.msk [vmem:[%s488_s19 + $0x8] sm:$0xff] %vm505_vm0, %v1741_v14 }
 0xb7f   : > { %1742 = vst.msk [vmem:[%s488_s19] sm:$0xff] %vm505_vm0, %v1740_v11 }
 0xb80 PF: > { %s24_s29 = sadd.s32 1, %s2085_s29  }
 0xb81   : > { %p21_p4 = scmp.ge.s32.totalorder %s24_s29, 4  }
 0xb83   :  { %23 = sbr.rel (!%p21_p4) target bundleno = 1 (0x1), region = 109 }

</bundles_post_ra>
